<compile_context>
chip_gen: v7x
topology: tpu7x:2x2x1
jax: 0.10.0
libtpu: 0.0.40
codegen_flags: <defaults>
</compile_context>

<pallas_src>
import functools
import math

import jax
import jax.numpy as jnp
from jax.experimental import pallas as pl
from jax.experimental.pallas import tpu as pltpu


# ----------------------------- Pallas kernel ---------------------------------

def _layer_norm(x, gamma, beta, eps=1e-5):
    mu = jnp.mean(x, axis=-1, keepdims=True)
    var = jnp.mean((x - mu) ** 2, axis=-1, keepdims=True)
    return (x - mu) * jax.lax.rsqrt(var + eps) * gamma + beta


def encoder_stack_kernel(src_ref, pos_ref, mask_ref,
                         wqk_ref, bqk_ref, wv_ref, bv_ref,
                         wo_ref, bo_ref, g1_ref, be1_ref,
                         w1_ref, b1_ref, w2_ref, b2_ref,
                         g2_ref, be2_ref,
                         out_ref,
                         attn_scratch,
                         *, num_heads, head_dim, q_block, ff_block):
    layer = pl.program_id(1)
    bf = jnp.bfloat16

    Bblk, S, D = out_ref.shape
    rows = Bblk * S
    FF = w1_ref.shape[-1]

    # Activation carry lives in the output block (block index constant along the inner,
    # "arbitrary" layer axis -> stays VMEM-resident; HBM writeback only on batch-block change).
    @pl.when(layer == 0)
    def _():
        out_ref[...] = src_ref[...]

    x2 = out_ref[...].reshape(rows, D)                        # (Bblk*S, D) f32
    pos2 = pos_ref[...].reshape(rows, D)

    # --- self attention -------------------------------------------------------
    # q = k = (x + pos) @ Wqk (fused; softmax scale pre-folded into Wq/bq); v = x @ Wv (no pos).
    # bf16 cast happens once, right after the bias adds.
    qk = (jnp.dot((x2 + pos2).astype(bf), wqk_ref[0],
                  preferred_element_type=jnp.float32) + bqk_ref[0]).astype(bf)   # (rows, 2D)
    v = (jnp.dot(x2.astype(bf), wv_ref[0],
                 preferred_element_type=jnp.float32) + bv_ref[0]).astype(bf)     # (rows, D)

    # Per-(batch, head) attention with query-row tiling.  Each head's output goes into an
    # (rows, D) VMEM scratch at its static column range; then one fused Wo matmul below.
    for b in range(Bblk):
        r0 = b * S
        mask_add = mask_ref[b]                                # (1, S) additive (0 / -1e9)
        for h in range(num_heads):
            lo = h * head_dim
            kh = qk[r0:r0 + S, D + lo:D + lo + head_dim]      # (S, dh) bf16
            vh = v[r0:r0 + S, lo:lo + head_dim]               # (S, dh) bf16
            for q0 in range(0, S, q_block):
                qb = min(q_block, S - q0)
                qh = qk[r0 + q0:r0 + q0 + qb, lo:lo + head_dim]
                # scores = q_h @ k_h^T without an explicit transpose op
                s = jax.lax.dot_general(qh, kh, (((1,), (1,)), ((), ())),
                                        preferred_element_type=jnp.float32)      # (qb, S)
                s = s + mask_add
                s = s - jnp.max(s, axis=-1, keepdims=True)
                e = jnp.exp(s)
                p = e * pl.reciprocal(jnp.sum(e, axis=-1, keepdims=True), approx=True)
                attn_scratch[r0 + q0:r0 + q0 + qb, lo:lo + head_dim] = jnp.dot(
                    p.astype(bf), vh, preferred_element_type=jnp.float32)

    # Single fused output projection: concat_h(o_h) @ Wo == scratch @ Wo (contraction depth D).
    attn = jnp.dot(attn_scratch[...].astype(bf), wo_ref[0],
                   preferred_element_type=jnp.float32) + bo_ref[0]

    # --- residual + norm1 -----------------------------------------------------
    x2 = _layer_norm(x2 + attn, g1_ref[0], be1_ref[0])

    # --- feed-forward (tiled over FF columns so (rows, FF) stays bounded) ------
    x2b = x2.astype(bf)
    ff = jnp.zeros((rows, D), jnp.float32)
    for f0 in range(0, FF, ff_block):
        fb = min(ff_block, FF - f0)
        h1 = jnp.dot(x2b, w1_ref[0, :, f0:f0 + fb],
                     preferred_element_type=jnp.float32) + b1_ref[0, :, f0:f0 + fb]
        ff = ff + jnp.dot(jnp.maximum(h1, 0.0).astype(bf), w2_ref[0, f0:f0 + fb, :],
                          preferred_element_type=jnp.float32)
    ff = ff + b2_ref[0]

    # --- residual + norm2 -----------------------------------------------------
    x2 = _layer_norm(x2 + ff, g2_ref[0], be2_ref[0])
    out_ref[...] = x2.reshape(Bblk, S, D)


def transformer_encoder(src, pad_mask, pos, stacked, *, num_heads,
                        batch_block=None, q_block=256, ff_block=512):
    """src, pos: (S, B, D); pad_mask: (B, S) bool (True = padded). Returns (S, B, D)."""
    S, B, D = src.shape
    L = stacked["wqk"].shape[0]
    FF = stacked["w1"].shape[2]
    head_dim = D // num_heads

    if batch_block is None:
        # Whole batch per grid step: each layer's weights are DMA'd once per layer (not once per
        # batch element) and B*S rows feed every matmul.  For v7x with larger B use B // 2 so the
        # "parallel" grid axis keeps >= 2 blocks (one per TensorCore).
        batch_block = B
    assert B % batch_block == 0
    nb = B // batch_block

    x = jnp.transpose(src, (1, 0, 2)).astype(jnp.float32)     # (B, S, D)
    p = jnp.transpose(pos, (1, 0, 2)).astype(jnp.float32)
    mask_add = jnp.where(pad_mask, -1e9, 0.0).astype(jnp.float32).reshape(B, 1, S)

    kernel = functools.partial(encoder_stack_kernel,
                               num_heads=num_heads, head_dim=head_dim,
                               q_block=min(q_block, S), ff_block=min(ff_block, FF))

    def w3(r, c):   # per-layer parameter stacked over L: block (1, r, c), indexed by layer
        return pl.BlockSpec((1, r, c), lambda bb, l: (l, 0, 0))

    def act(shape):  # activation-sized blocks, indexed by batch block only
        return pl.BlockSpec(shape, lambda bb, l: (bb, 0, 0))

    # Generation-aware VMEM budget: ~3/4 of capacity (≈96 MiB on v5e/v6e, ≈48 MiB on v7x).
    try:
        cap = pltpu.get_tpu_info().vmem_capacity_bytes
    except Exception:
        cap = 64 * 1024 * 1024
    vmem_limit = min(cap * 3 // 4, 100 * 1024 * 1024)

    out = pl.pallas_call(
        kernel,
        out_shape=jax.ShapeDtypeStruct((B, S, D), jnp.float32),
        grid_spec=pltpu.PrefetchScalarGridSpec(
            num_scalar_prefetch=0,
            grid=(nb, L),                                      # layer axis innermost
            in_specs=[
                act((batch_block, S, D)),                      # src
                act((batch_block, S, D)),                      # pos
                act((batch_block, 1, S)),                      # additive pad mask
                w3(D, 2 * D), w3(1, 2 * D),                    # Wqk (fused), bqk
                w3(D, D), w3(1, D),                            # Wv, bv
                w3(D, D), w3(1, D),                            # Wo, bo
                w3(1, D), w3(1, D),                            # norm1 gamma, beta
                w3(D, FF), w3(1, FF),                          # W1, b1
                w3(FF, D), w3(1, D),                           # W2, b2
                w3(1, D), w3(1, D),                            # norm2 gamma, beta
            ],
            out_specs=act((batch_block, S, D)),                # doubles as activation carry
            scratch_shapes=[pltpu.VMEM((batch_block * S, D), jnp.float32)],   # head-concat slab
        ),
        compiler_params=pltpu.CompilerParams(
            dimension_semantics=("parallel", "arbitrary"),
            vmem_limit_bytes=int(vmem_limit)),
    )(x, p, mask_add,
      stacked["wqk"], stacked["bqk"], stacked["wv"], stacked["bv"],
      stacked["wo"], stacked["bo"], stacked["g1"], stacked["be1"],
      stacked["w1"], stacked["b1"], stacked["w2"], stacked["b2"],
      stacked["g2"], stacked["be2"])
    return jnp.transpose(out, (1, 0, 2))


# ----------------------- host-side parameter preparation ----------------------

def stack_layer_params(params, num_heads):
    """Stack per-layer params over L, fuse Wq|Wk, fold the softmax scale, cast weights to bf16."""
    D = params[0]["wq"].shape[0]
    scale = 1.0 / math.sqrt(D // num_heads)
    bf = jnp.bfloat16

    def st(fn):
        return jnp.stack([fn(p) for p in params], axis=0)

    return {
        "wqk": st(lambda p: jnp.concatenate([p["wq"] * scale, p["wk"]], axis=1)).astype(bf),
        "bqk": st(lambda p: jnp.concatenate([p["bq"] * scale, p["bk"]], axis=1)),
        "wv": st(lambda p: p["wv"]).astype(bf), "bv": st(lambda p: p["bv"]),
        "wo": st(lambda p: p["wo"]).astype(bf), "bo": st(lambda p: p["bo"]),
        "g1": st(lambda p: p["g1"]), "be1": st(lambda p: p["be1"]),
        "w1": st(lambda p: p["w1"]).astype(bf), "b1": st(lambda p: p["b1"]),
        "w2": st(lambda p: p["w2"]).astype(bf), "b2": st(lambda p: p["b2"]),
        "g2": st(lambda p: p["g2"]), "be2": st(lambda p: p["be2"]),
    }


# ----------------------------- reference (pure JAX) ---------------------------
# Same stacked/bf16 parameters and bf16-input / f32-accumulation matmul numerics as the kernel.

def reference_encoder(src, pad_mask, pos, stacked, *, num_heads):
    S, B, D = src.shape
    dh = D // num_heads
    bf = jnp.bfloat16
    x = jnp.transpose(src, (1, 0, 2)).astype(jnp.float32)   # (B, S, D)
    p = jnp.transpose(pos, (1, 0, 2)).astype(jnp.float32)
    mask_add = jnp.where(pad_mask, -1e9, 0.0).astype(jnp.float32)   # (B, S)

    def ln(y, g, b, eps=1e-5):
        mu = jnp.mean(y, -1, keepdims=True)
        var = jnp.mean((y - mu) ** 2, -1, keepdims=True)
        return (y - mu) * jax.lax.rsqrt(var + eps) * g + b

    L = stacked["wqk"].shape[0]
    for l in range(L):
        qk_in = (x + p).astype(bf)
        qk = jnp.dot(qk_in, stacked["wqk"][l], preferred_element_type=jnp.float32) + stacked["bqk"][l]
        v = jnp.dot(x.astype(bf), stacked["wv"][l], preferred_element_type=jnp.float32) + stacked["bv"][l]
        q = qk[..., :D].reshape(B, S, num_heads, dh)
        k = qk[..., D:].reshape(B, S, num_heads, dh)
        vh = v.reshape(B, S, num_heads, dh)
        s = jnp.einsum("bqhd,bkhd->bhqk", q.astype(bf), k.astype(bf),
                       preferred_element_type=jnp.float32)
        s = s + mask_add[:, None, None, :]
        a = jax.nn.softmax(s, axis=-1)
        o = jnp.einsum("bhqk,bkhd->bqhd", a.astype(bf), vh.astype(bf),
                       preferred_element_type=jnp.float32).reshape(B, S, D)
        attn = jnp.dot(o.astype(bf), stacked["wo"][l],
                       preferred_element_type=jnp.float32) + stacked["bo"][l]
        x = ln(x + attn, stacked["g1"][l], stacked["be1"][l])
        h1 = jnp.maximum(jnp.dot(x.astype(bf), stacked["w1"][l],
                                 preferred_element_type=jnp.float32) + stacked["b1"][l], 0.0)
        ff = jnp.dot(h1.astype(bf), stacked["w2"][l],
                     preferred_element_type=jnp.float32) + stacked["b2"][l]
        x = ln(x + ff, stacked["g2"][l], stacked["be2"][l])
    return jnp.transpose(x, (1, 0, 2))


# ----------------------------- parameter init ---------------------------------

def init_params(key, num_layers, d_model, dim_ff):
    params = []
    for l in range(num_layers):
        ks = jax.random.split(jax.random.fold_in(key, l), 8)
        sc = 0.02
        lp = {
            "wq": sc * jax.random.normal(ks[0], (d_model, d_model), jnp.float32),
            "bq": jnp.zeros((1, d_model), jnp.float32),
            "wk": sc * jax.random.normal(ks[1], (d_model, d_model), jnp.float32),
            "bk": jnp.zeros((1, d_model), jnp.float32),
            "wv": sc * jax.random.normal(ks[2], (d_model, d_model), jnp.float32),
            "bv": jnp.zeros((1, d_model), jnp.float32),
            "wo": sc * jax.random.normal(ks[3], (d_model, d_model), jnp.float32),
            "bo": sc * jax.random.normal(ks[4], (1, d_model), jnp.float32),
            "g1": jnp.ones((1, d_model), jnp.float32),
            "be1": jnp.zeros((1, d_model), jnp.float32),
            "w1": sc * jax.random.normal(ks[5], (d_model, dim_ff), jnp.float32),
            "b1": sc * jax.random.normal(ks[6], (1, dim_ff), jnp.float32),
            "w2": sc * jax.random.normal(ks[7], (dim_ff, d_model), jnp.float32),
            "b2": jnp.zeros((1, d_model), jnp.float32),
            "g2": jnp.ones((1, d_model), jnp.float32),
            "be2": jnp.zeros((1, d_model), jnp.float32),
        }
        params.append(lp)
    return params


# ----------------------------- main -------------------------------------------

if __name__ == "__main__":
    S, B, D = 8, 2, 32
    NUM_HEADS = 4
    DIM_FF = 64
    NUM_LAYERS = 2

    key = jax.random.PRNGKey(0)
    k_src, k_pos, k_par = jax.random.split(key, 3)

    src = jax.random.normal(k_src, (S, B, D), jnp.float32)
    pos = jax.random.normal(k_pos, (S, B, D), jnp.float32)
    # pad last two positions of batch element 1 (True = masked, like key_padding_mask)
    pad_mask = jnp.zeros((B, S), jnp.bool_).at[1, S - 2:].set(True)

    params = init_params(k_par, NUM_LAYERS, D, DIM_FF)
    stacked = stack_layer_params(params, NUM_HEADS)

    out = transformer_encoder(src, pad_mask, pos, stacked, num_heads=NUM_HEADS)
    out = jax.block_until_ready(out)

    ref = reference_encoder(src, pad_mask, pos, stacked, num_heads=NUM_HEADS)
    assert out.shape == (S, B, D)
    assert jnp.allclose(out, ref, rtol=1e-2, atol=1e-2), "mismatch vs reference"

    print("KERNEL_OK")
</pallas_src>

<mosaic_0001>
module attributes {stable_mosaic.version = 11 : i64} {
  func.func @encoder_stack_kernel(%arg0: i32, %arg1: i32, %arg2: memref<2x8x32xf32, #tpu.memory_space<vmem>>, %arg3: memref<2x8x32xf32, #tpu.memory_space<vmem>>, %arg4: memref<2x1x8xf32, #tpu.memory_space<vmem>>, %arg5: memref<1x32x64xbf16, #tpu.memory_space<vmem>>, %arg6: memref<1x1x64xf32, #tpu.memory_space<vmem>>, %arg7: memref<1x32x32xbf16, #tpu.memory_space<vmem>>, %arg8: memref<1x1x32xf32, #tpu.memory_space<vmem>>, %arg9: memref<1x32x32xbf16, #tpu.memory_space<vmem>>, %arg10: memref<1x1x32xf32, #tpu.memory_space<vmem>>, %arg11: memref<1x1x32xf32, #tpu.memory_space<vmem>>, %arg12: memref<1x1x32xf32, #tpu.memory_space<vmem>>, %arg13: memref<1x32x64xbf16, #tpu.memory_space<vmem>>, %arg14: memref<1x1x64xf32, #tpu.memory_space<vmem>>, %arg15: memref<1x64x32xbf16, #tpu.memory_space<vmem>>, %arg16: memref<1x1x32xf32, #tpu.memory_space<vmem>>, %arg17: memref<1x1x32xf32, #tpu.memory_space<vmem>>, %arg18: memref<1x1x32xf32, #tpu.memory_space<vmem>>, %arg19: memref<2x8x32xf32, #tpu.memory_space<vmem>>, %arg20: memref<16x32xf32, #tpu.memory_space<vmem>>) attributes {dimension_semantics = [#tpu.dimension_semantics<parallel>, #tpu.dimension_semantics<arbitrary>], iteration_bounds = array<i64: 1, 2>, scalar_prefetch = 0 : i64, scratch_operands = 1 : i64, tpu.core_type = #tpu.core_type<tc>, window_params = [{transform_indices = @transform_0, window_bounds = array<i64: 2, 8, 32>}, {transform_indices = @transform_1, window_bounds = array<i64: 2, 8, 32>}, {transform_indices = @transform_2, window_bounds = array<i64: 2, 1, 8>}, {transform_indices = @transform_3, window_bounds = array<i64: 1, 32, 64>}, {transform_indices = @transform_4, window_bounds = array<i64: 1, 1, 64>}, {transform_indices = @transform_5, window_bounds = array<i64: 1, 32, 32>}, {transform_indices = @transform_6, window_bounds = array<i64: 1, 1, 32>}, {transform_indices = @transform_7, window_bounds = array<i64: 1, 32, 32>}, {transform_indices = @transform_8, window_bounds = array<i64: 1, 1, 32>}, {transform_indices = @transform_9, window_bounds = array<i64: 1, 1, 32>}, {transform_indices = @transform_10, window_bounds = array<i64: 1, 1, 32>}, {transform_indices = @transform_11, window_bounds = array<i64: 1, 32, 64>}, {transform_indices = @transform_12, window_bounds = array<i64: 1, 1, 64>}, {transform_indices = @transform_13, window_bounds = array<i64: 1, 64, 32>}, {transform_indices = @transform_14, window_bounds = array<i64: 1, 1, 32>}, {transform_indices = @transform_15, window_bounds = array<i64: 1, 1, 32>}, {transform_indices = @transform_16, window_bounds = array<i64: 1, 1, 32>}, {transform_indices = @transform_17, window_bounds = array<i64: 2, 8, 32>}]} {
    %c0_i32 = arith.constant 0 : i32
    %0 = arith.cmpi eq, %arg1, %c0_i32 : i32
    %1 = arith.extui %0 : i1 to i32
    %c0_i32_0 = arith.constant 0 : i32
    %2 = arith.cmpi ne, %1, %c0_i32_0 : i32
    scf.if %2 {
      %c0_119 = arith.constant 0 : index
      %c0_120 = arith.constant 0 : index
      %c0_121 = arith.constant 0 : index
      %267 = vector.load %arg2[%c0_119, %c0_120, %c0_121] : memref<2x8x32xf32, #tpu.memory_space<vmem>>, vector<2x8x32xf32>
      %c0_122 = arith.constant 0 : index
      %c0_123 = arith.constant 0 : index
      %c0_124 = arith.constant 0 : index
      %268 = vector.load %arg19[%c0_122, %c0_123, %c0_124] : memref<2x8x32xf32, #tpu.memory_space<vmem>>, vector<2x8x32xf32>
      tpu.vector_store %arg19[%c0_122, %c0_123, %c0_124], %267 {strides = array<i32>} : memref<2x8x32xf32, #tpu.memory_space<vmem>>, vector<2x8x32xf32>,
    } else {
    }
    %c0 = arith.constant 0 : index
    %c0_1 = arith.constant 0 : index
    %c0_2 = arith.constant 0 : index
    %3 = vector.load %arg19[%c0, %c0_1, %c0_2] : memref<2x8x32xf32, #tpu.memory_space<vmem>>, vector<2x8x32xf32>
    %4 = vector.shape_cast %3 : vector<2x8x32xf32> to vector<16x32xf32>
    %c0_3 = arith.constant 0 : index
    %c0_4 = arith.constant 0 : index
    %c0_5 = arith.constant 0 : index
    %5 = vector.load %arg3[%c0_3, %c0_4, %c0_5] : memref<2x8x32xf32, #tpu.memory_space<vmem>>, vector<2x8x32xf32>
    %6 = vector.shape_cast %5 : vector<2x8x32xf32> to vector<16x32xf32>
    %7 = arith.addf %4, %6 : vector<16x32xf32>
    %8 = arith.truncf %7 : vector<16x32xf32> to vector<16x32xbf16>
    %c0_6 = arith.constant 0 : index
    %c0_7 = arith.constant 0 : index
    %c0_8 = arith.constant 0 : index
    %9 = vector.load %arg5[%c0_6, %c0_7, %c0_8] : memref<1x32x64xbf16, #tpu.memory_space<vmem>>, vector<1x32x64xbf16>
    %10 = vector.shape_cast %9 : vector<1x32x64xbf16> to vector<32x64xbf16>
    %cst = arith.constant dense<0.000000e+00> : vector<16x64xf32>
    %11 = tpu.matmul %8, %10, %cst {dimension_numbers = #tpu.dot_dimension_numbers<[1], [0], [0], [1], [0, 0, 1, 1], [], []>} : vector<16x32xbf16>, vector<32x64xbf16>, vector<16x64xf32> -> vector<16x64xf32>
    %c0_9 = arith.constant 0 : index
    %c0_10 = arith.constant 0 : index
    %c0_11 = arith.constant 0 : index
    %12 = vector.load %arg6[%c0_9, %c0_10, %c0_11] : memref<1x1x64xf32, #tpu.memory_space<vmem>>, vector<1x1x64xf32>
    %13 = vector.shape_cast %12 : vector<1x1x64xf32> to vector<1x64xf32>
    %14 = vector.broadcast %13 : vector<1x64xf32> to vector<16x64xf32>
    %15 = arith.addf %11, %14 : vector<16x64xf32>
    %16 = arith.truncf %15 : vector<16x64xf32> to vector<16x64xbf16>
    %17 = arith.truncf %4 : vector<16x32xf32> to vector<16x32xbf16>
    %c0_12 = arith.constant 0 : index
    %c0_13 = arith.constant 0 : index
    %c0_14 = arith.constant 0 : index
    %18 = vector.load %arg7[%c0_12, %c0_13, %c0_14] : memref<1x32x32xbf16, #tpu.memory_space<vmem>>, vector<1x32x32xbf16>
    %19 = vector.shape_cast %18 : vector<1x32x32xbf16> to vector<32x32xbf16>
    %cst_15 = arith.constant dense<0.000000e+00> : vector<16x32xf32>
    %20 = tpu.matmul %17, %19, %cst_15 {dimension_numbers = #tpu.dot_dimension_numbers<[1], [0], [0], [1], [0, 0, 1, 1], [], []>} : vector<16x32xbf16>, vector<32x32xbf16>, vector<16x32xf32> -> vector<16x32xf32>
    %c0_16 = arith.constant 0 : index
    %c0_17 = arith.constant 0 : index
    %c0_18 = arith.constant 0 : index
    %21 = vector.load %arg8[%c0_16, %c0_17, %c0_18] : memref<1x1x32xf32, #tpu.memory_space<vmem>>, vector<1x1x32xf32>
    %22 = vector.shape_cast %21 : vector<1x1x32xf32> to vector<1x32xf32>
    %23 = vector.broadcast %22 : vector<1x32xf32> to vector<16x32xf32>
    %24 = arith.addf %20, %23 : vector<16x32xf32>
    %25 = arith.truncf %24 : vector<16x32xf32> to vector<16x32xbf16>
    %c0_19 = arith.constant 0 : index
    %c0_20 = arith.constant 0 : index
    %c0_21 = arith.constant 0 : index
    %26 = vector.load %arg4[%c0_19, %c0_20, %c0_21] : memref<2x1x8xf32, #tpu.memory_space<vmem>>, vector<1x1x8xf32>
    %27 = vector.shape_cast %26 : vector<1x1x8xf32> to vector<1x8xf32>
    %28 = vector.extract_strided_slice %16 {offsets = [0, 32], sizes = [8, 8], strides = [1, 1]} : vector<16x64xbf16> to vector<8x8xbf16>
    %29 = vector.extract_strided_slice %25 {offsets = [0, 0], sizes = [8, 8], strides = [1, 1]} : vector<16x32xbf16> to vector<8x8xbf16>
    %30 = vector.extract_strided_slice %16 {offsets = [0, 0], sizes = [8, 8], strides = [1, 1]} : vector<16x64xbf16> to vector<8x8xbf16>
    %cst_22 = arith.constant dense<0.000000e+00> : vector<8x8xf32>
    %31 = tpu.matmul %30, %28, %cst_22 {dimension_numbers = #tpu.dot_dimension_numbers<[1], [1], [0], [0], [0, 0, 1, 0], [], []>} : vector<8x8xbf16>, vector<8x8xbf16>, vector<8x8xf32> -> vector<8x8xf32>
    %32 = vector.broadcast %27 : vector<1x8xf32> to vector<8x8xf32>
    %33 = arith.addf %31, %32 : vector<8x8xf32>
    %cst_23 = arith.constant dense<0xFF800000> : vector<8xf32>
    %34 = vector.multi_reduction <maximumf>, %33, %cst_23 [1] : vector<8x8xf32> to vector<8xf32>
    %35 = vector.shape_cast %34 : vector<8xf32> to vector<8x1xf32>
    %36 = vector.broadcast %35 : vector<8x1xf32> to vector<8x8xf32>
    %37 = arith.subf %33, %36 : vector<8x8xf32>
    %38 = math.exp %37 : vector<8x8xf32>
    %cst_24 = arith.constant dense<0.000000e+00> : vector<8xf32>
    %39 = vector.multi_reduction <add>, %38, %cst_24 [1] : vector<8x8xf32> to vector<8xf32>
    %40 = vector.shape_cast %39 : vector<8xf32> to vector<8x1xf32>
    %41 = tpu.reciprocal %40 {approx = true} : vector<8x1xf32> -> vector<8x1xf32>
    %42 = vector.broadcast %41 : vector<8x1xf32> to vector<8x8xf32>
    %43 = arith.mulf %38, %42 : vector<8x8xf32>
    %44 = arith.truncf %43 : vector<8x8xf32> to vector<8x8xbf16>
    %cst_25 = arith.constant dense<0.000000e+00> : vector<8x8xf32>
    %45 = tpu.matmul %44, %29, %cst_25 {dimension_numbers = #tpu.dot_dimension_numbers<[1], [0], [0], [1], [0, 0, 1, 1], [], []>} : vector<8x8xbf16>, vector<8x8xbf16>, vector<8x8xf32> -> vector<8x8xf32>
    %c0_26 = arith.constant 0 : index
    %c0_27 = arith.constant 0 : index
    %46 = vector.load %arg20[%c0_26, %c0_27] : memref<16x32xf32, #tpu.memory_space<vmem>>, vector<8x8xf32>
    tpu.vector_store %arg20[%c0_26, %c0_27], %45 {strides = array<i32>} : memref<16x32xf32, #tpu.memory_space<vmem>>, vector<8x8xf32>,
    %47 = vector.extract_strided_slice %16 {offsets = [0, 40], sizes = [8, 8], strides = [1, 1]} : vector<16x64xbf16> to vector<8x8xbf16>
    %48 = vector.extract_strided_slice %25 {offsets = [0, 8], sizes = [8, 8], strides = [1, 1]} : vector<16x32xbf16> to vector<8x8xbf16>
    %49 = vector.extract_strided_slice %16 {offsets = [0, 8], sizes = [8, 8], strides = [1, 1]} : vector<16x64xbf16> to vector<8x8xbf16>
    %cst_28 = arith.constant dense<0.000000e+00> : vector<8x8xf32>
    %50 = tpu.matmul %49, %47, %cst_28 {dimension_numbers = #tpu.dot_dimension_numbers<[1], [1], [0], [0], [0, 0, 1, 0], [], []>} : vector<8x8xbf16>, vector<8x8xbf16>, vector<8x8xf32> -> vector<8x8xf32>
    %51 = vector.broadcast %27 : vector<1x8xf32> to vector<8x8xf32>
    %52 = arith.addf %50, %51 : vector<8x8xf32>
    %cst_29 = arith.constant dense<0xFF800000> : vector<8xf32>
    %53 = vector.multi_reduction <maximumf>, %52, %cst_29 [1] : vector<8x8xf32> to vector<8xf32>
    %54 = vector.shape_cast %53 : vector<8xf32> to vector<8x1xf32>
    %55 = vector.broadcast %54 : vector<8x1xf32> to vector<8x8xf32>
    %56 = arith.subf %52, %55 : vector<8x8xf32>
    %57 = math.exp %56 : vector<8x8xf32>
    %cst_30 = arith.constant dense<0.000000e+00> : vector<8xf32>
    %58 = vector.multi_reduction <add>, %57, %cst_30 [1] : vector<8x8xf32> to vector<8xf32>
    %59 = vector.shape_cast %58 : vector<8xf32> to vector<8x1xf32>
    %60 = tpu.reciprocal %59 {approx = true} : vector<8x1xf32> -> vector<8x1xf32>
    %61 = vector.broadcast %60 : vector<8x1xf32> to vector<8x8xf32>
    %62 = arith.mulf %57, %61 : vector<8x8xf32>
    %63 = arith.truncf %62 : vector<8x8xf32> to vector<8x8xbf16>
    %cst_31 = arith.constant dense<0.000000e+00> : vector<8x8xf32>
    %64 = tpu.matmul %63, %48, %cst_31 {dimension_numbers = #tpu.dot_dimension_numbers<[1], [0], [0], [1], [0, 0, 1, 1], [], []>} : vector<8x8xbf16>, vector<8x8xbf16>, vector<8x8xf32> -> vector<8x8xf32>
    %c0_32 = arith.constant 0 : index
    %c8 = arith.constant 8 : index
    %65 = vector.load %arg20[%c0_32, %c8] : memref<16x32xf32, #tpu.memory_space<vmem>>, vector<8x8xf32>
    tpu.vector_store %arg20[%c0_32, %c8], %64 {strides = array<i32>} : memref<16x32xf32, #tpu.memory_space<vmem>>, vector<8x8xf32>,
    %66 = vector.extract_strided_slice %16 {offsets = [0, 48], sizes = [8, 8], strides = [1, 1]} : vector<16x64xbf16> to vector<8x8xbf16>
    %67 = vector.extract_strided_slice %25 {offsets = [0, 16], sizes = [8, 8], strides = [1, 1]} : vector<16x32xbf16> to vector<8x8xbf16>
    %68 = vector.extract_strided_slice %16 {offsets = [0, 16], sizes = [8, 8], strides = [1, 1]} : vector<16x64xbf16> to vector<8x8xbf16>
    %cst_33 = arith.constant dense<0.000000e+00> : vector<8x8xf32>
    %69 = tpu.matmul %68, %66, %cst_33 {dimension_numbers = #tpu.dot_dimension_numbers<[1], [1], [0], [0], [0, 0, 1, 0], [], []>} : vector<8x8xbf16>, vector<8x8xbf16>, vector<8x8xf32> -> vector<8x8xf32>
    %70 = vector.broadcast %27 : vector<1x8xf32> to vector<8x8xf32>
    %71 = arith.addf %69, %70 : vector<8x8xf32>
    %cst_34 = arith.constant dense<0xFF800000> : vector<8xf32>
    %72 = vector.multi_reduction <maximumf>, %71, %cst_34 [1] : vector<8x8xf32> to vector<8xf32>
    %73 = vector.shape_cast %72 : vector<8xf32> to vector<8x1xf32>
    %74 = vector.broadcast %73 : vector<8x1xf32> to vector<8x8xf32>
    %75 = arith.subf %71, %74 : vector<8x8xf32>
    %76 = math.exp %75 : vector<8x8xf32>
    %cst_35 = arith.constant dense<0.000000e+00> : vector<8xf32>
    %77 = vector.multi_reduction <add>, %76, %cst_35 [1] : vector<8x8xf32> to vector<8xf32>
    %78 = vector.shape_cast %77 : vector<8xf32> to vector<8x1xf32>
    %79 = tpu.reciprocal %78 {approx = true} : vector<8x1xf32> -> vector<8x1xf32>
    %80 = vector.broadcast %79 : vector<8x1xf32> to vector<8x8xf32>
    %81 = arith.mulf %76, %80 : vector<8x8xf32>
    %82 = arith.truncf %81 : vector<8x8xf32> to vector<8x8xbf16>
    %cst_36 = arith.constant dense<0.000000e+00> : vector<8x8xf32>
    %83 = tpu.matmul %82, %67, %cst_36 {dimension_numbers = #tpu.dot_dimension_numbers<[1], [0], [0], [1], [0, 0, 1, 1], [], []>} : vector<8x8xbf16>, vector<8x8xbf16>, vector<8x8xf32> -> vector<8x8xf32>
    %c0_37 = arith.constant 0 : index
    %c16 = arith.constant 16 : index
    %84 = vector.load %arg20[%c0_37, %c16] : memref<16x32xf32, #tpu.memory_space<vmem>>, vector<8x8xf32>
    tpu.vector_store %arg20[%c0_37, %c16], %83 {strides = array<i32>} : memref<16x32xf32, #tpu.memory_space<vmem>>, vector<8x8xf32>,
    %85 = vector.extract_strided_slice %16 {offsets = [0, 56], sizes = [8, 8], strides = [1, 1]} : vector<16x64xbf16> to vector<8x8xbf16>
    %86 = vector.extract_strided_slice %25 {offsets = [0, 24], sizes = [8, 8], strides = [1, 1]} : vector<16x32xbf16> to vector<8x8xbf16>
    %87 = vector.extract_strided_slice %16 {offsets = [0, 24], sizes = [8, 8], strides = [1, 1]} : vector<16x64xbf16> to vector<8x8xbf16>
    %cst_38 = arith.constant dense<0.000000e+00> : vector<8x8xf32>
    %88 = tpu.matmul %87, %85, %cst_38 {dimension_numbers = #tpu.dot_dimension_numbers<[1], [1], [0], [0], [0, 0, 1, 0], [], []>} : vector<8x8xbf16>, vector<8x8xbf16>, vector<8x8xf32> -> vector<8x8xf32>
    %89 = vector.broadcast %27 : vector<1x8xf32> to vector<8x8xf32>
    %90 = arith.addf %88, %89 : vector<8x8xf32>
    %cst_39 = arith.constant dense<0xFF800000> : vector<8xf32>
    %91 = vector.multi_reduction <maximumf>, %90, %cst_39 [1] : vector<8x8xf32> to vector<8xf32>
    %92 = vector.shape_cast %91 : vector<8xf32> to vector<8x1xf32>
    %93 = vector.broadcast %92 : vector<8x1xf32> to vector<8x8xf32>
    %94 = arith.subf %90, %93 : vector<8x8xf32>
    %95 = math.exp %94 : vector<8x8xf32>
    %cst_40 = arith.constant dense<0.000000e+00> : vector<8xf32>
    %96 = vector.multi_reduction <add>, %95, %cst_40 [1] : vector<8x8xf32> to vector<8xf32>
    %97 = vector.shape_cast %96 : vector<8xf32> to vector<8x1xf32>
    %98 = tpu.reciprocal %97 {approx = true} : vector<8x1xf32> -> vector<8x1xf32>
    %99 = vector.broadcast %98 : vector<8x1xf32> to vector<8x8xf32>
    %100 = arith.mulf %95, %99 : vector<8x8xf32>
    %101 = arith.truncf %100 : vector<8x8xf32> to vector<8x8xbf16>
    %cst_41 = arith.constant dense<0.000000e+00> : vector<8x8xf32>
    %102 = tpu.matmul %101, %86, %cst_41 {dimension_numbers = #tpu.dot_dimension_numbers<[1], [0], [0], [1], [0, 0, 1, 1], [], []>} : vector<8x8xbf16>, vector<8x8xbf16>, vector<8x8xf32> -> vector<8x8xf32>
    %c0_42 = arith.constant 0 : index
    %c24 = arith.constant 24 : index
    %103 = vector.load %arg20[%c0_42, %c24] : memref<16x32xf32, #tpu.memory_space<vmem>>, vector<8x8xf32>
    tpu.vector_store %arg20[%c0_42, %c24], %102 {strides = array<i32>} : memref<16x32xf32, #tpu.memory_space<vmem>>, vector<8x8xf32>,
    %c1 = arith.constant 1 : index
    %c0_43 = arith.constant 0 : index
    %c0_44 = arith.constant 0 : index
    %104 = vector.load %arg4[%c1, %c0_43, %c0_44] : memref<2x1x8xf32, #tpu.memory_space<vmem>>, vector<1x1x8xf32>
    %105 = vector.shape_cast %104 : vector<1x1x8xf32> to vector<1x8xf32>
    %106 = vector.extract_strided_slice %16 {offsets = [8, 32], sizes = [8, 8], strides = [1, 1]} : vector<16x64xbf16> to vector<8x8xbf16>
    %107 = vector.extract_strided_slice %25 {offsets = [8, 0], sizes = [8, 8], strides = [1, 1]} : vector<16x32xbf16> to vector<8x8xbf16>
    %108 = vector.extract_strided_slice %16 {offsets = [8, 0], sizes = [8, 8], strides = [1, 1]} : vector<16x64xbf16> to vector<8x8xbf16>
    %cst_45 = arith.constant dense<0.000000e+00> : vector<8x8xf32>
    %109 = tpu.matmul %108, %106, %cst_45 {dimension_numbers = #tpu.dot_dimension_numbers<[1], [1], [0], [0], [0, 0, 1, 0], [], []>} : vector<8x8xbf16>, vector<8x8xbf16>, vector<8x8xf32> -> vector<8x8xf32>
    %110 = vector.broadcast %105 : vector<1x8xf32> to vector<8x8xf32>
    %111 = arith.addf %109, %110 : vector<8x8xf32>
    %cst_46 = arith.constant dense<0xFF800000> : vector<8xf32>
    %112 = vector.multi_reduction <maximumf>, %111, %cst_46 [1] : vector<8x8xf32> to vector<8xf32>
    %113 = vector.shape_cast %112 : vector<8xf32> to vector<8x1xf32>
    %114 = vector.broadcast %113 : vector<8x1xf32> to vector<8x8xf32>
    %115 = arith.subf %111, %114 : vector<8x8xf32>
    %116 = math.exp %115 : vector<8x8xf32>
    %cst_47 = arith.constant dense<0.000000e+00> : vector<8xf32>
    %117 = vector.multi_reduction <add>, %116, %cst_47 [1] : vector<8x8xf32> to vector<8xf32>
    %118 = vector.shape_cast %117 : vector<8xf32> to vector<8x1xf32>
    %119 = tpu.reciprocal %118 {approx = true} : vector<8x1xf32> -> vector<8x1xf32>
    %120 = vector.broadcast %119 : vector<8x1xf32> to vector<8x8xf32>
    %121 = arith.mulf %116, %120 : vector<8x8xf32>
    %122 = arith.truncf %121 : vector<8x8xf32> to vector<8x8xbf16>
    %cst_48 = arith.constant dense<0.000000e+00> : vector<8x8xf32>
    %123 = tpu.matmul %122, %107, %cst_48 {dimension_numbers = #tpu.dot_dimension_numbers<[1], [0], [0], [1], [0, 0, 1, 1], [], []>} : vector<8x8xbf16>, vector<8x8xbf16>, vector<8x8xf32> -> vector<8x8xf32>
    %c8_49 = arith.constant 8 : index
    %c0_50 = arith.constant 0 : index
    %124 = vector.load %arg20[%c8_49, %c0_50] : memref<16x32xf32, #tpu.memory_space<vmem>>, vector<8x8xf32>
    tpu.vector_store %arg20[%c8_49, %c0_50], %123 {strides = array<i32>} : memref<16x32xf32, #tpu.memory_space<vmem>>, vector<8x8xf32>,
    %125 = vector.extract_strided_slice %16 {offsets = [8, 40], sizes = [8, 8], strides = [1, 1]} : vector<16x64xbf16> to vector<8x8xbf16>
    %126 = vector.extract_strided_slice %25 {offsets = [8, 8], sizes = [8, 8], strides = [1, 1]} : vector<16x32xbf16> to vector<8x8xbf16>
    %127 = vector.extract_strided_slice %16 {offsets = [8, 8], sizes = [8, 8], strides = [1, 1]} : vector<16x64xbf16> to vector<8x8xbf16>
    %cst_51 = arith.constant dense<0.000000e+00> : vector<8x8xf32>
    %128 = tpu.matmul %127, %125, %cst_51 {dimension_numbers = #tpu.dot_dimension_numbers<[1], [1], [0], [0], [0, 0, 1, 0], [], []>} : vector<8x8xbf16>, vector<8x8xbf16>, vector<8x8xf32> -> vector<8x8xf32>
    %129 = vector.broadcast %105 : vector<1x8xf32> to vector<8x8xf32>
    %130 = arith.addf %128, %129 : vector<8x8xf32>
    %cst_52 = arith.constant dense<0xFF800000> : vector<8xf32>
    %131 = vector.multi_reduction <maximumf>, %130, %cst_52 [1] : vector<8x8xf32> to vector<8xf32>
    %132 = vector.shape_cast %131 : vector<8xf32> to vector<8x1xf32>
    %133 = vector.broadcast %132 : vector<8x1xf32> to vector<8x8xf32>
    %134 = arith.subf %130, %133 : vector<8x8xf32>
    %135 = math.exp %134 : vector<8x8xf32>
    %cst_53 = arith.constant dense<0.000000e+00> : vector<8xf32>
    %136 = vector.multi_reduction <add>, %135, %cst_53 [1] : vector<8x8xf32> to vector<8xf32>
    %137 = vector.shape_cast %136 : vector<8xf32> to vector<8x1xf32>
    %138 = tpu.reciprocal %137 {approx = true} : vector<8x1xf32> -> vector<8x1xf32>
    %139 = vector.broadcast %138 : vector<8x1xf32> to vector<8x8xf32>
    %140 = arith.mulf %135, %139 : vector<8x8xf32>
    %141 = arith.truncf %140 : vector<8x8xf32> to vector<8x8xbf16>
    %cst_54 = arith.constant dense<0.000000e+00> : vector<8x8xf32>
    %142 = tpu.matmul %141, %126, %cst_54 {dimension_numbers = #tpu.dot_dimension_numbers<[1], [0], [0], [1], [0, 0, 1, 1], [], []>} : vector<8x8xbf16>, vector<8x8xbf16>, vector<8x8xf32> -> vector<8x8xf32>
    %c8_55 = arith.constant 8 : index
    %c8_56 = arith.constant 8 : index
    %143 = vector.load %arg20[%c8_55, %c8_56] : memref<16x32xf32, #tpu.memory_space<vmem>>, vector<8x8xf32>
    tpu.vector_store %arg20[%c8_55, %c8_56], %142 {strides = array<i32>} : memref<16x32xf32, #tpu.memory_space<vmem>>, vector<8x8xf32>,
    %144 = vector.extract_strided_slice %16 {offsets = [8, 48], sizes = [8, 8], strides = [1, 1]} : vector<16x64xbf16> to vector<8x8xbf16>
    %145 = vector.extract_strided_slice %25 {offsets = [8, 16], sizes = [8, 8], strides = [1, 1]} : vector<16x32xbf16> to vector<8x8xbf16>
    %146 = vector.extract_strided_slice %16 {offsets = [8, 16], sizes = [8, 8], strides = [1, 1]} : vector<16x64xbf16> to vector<8x8xbf16>
    %cst_57 = arith.constant dense<0.000000e+00> : vector<8x8xf32>
    %147 = tpu.matmul %146, %144, %cst_57 {dimension_numbers = #tpu.dot_dimension_numbers<[1], [1], [0], [0], [0, 0, 1, 0], [], []>} : vector<8x8xbf16>, vector<8x8xbf16>, vector<8x8xf32> -> vector<8x8xf32>
    %148 = vector.broadcast %105 : vector<1x8xf32> to vector<8x8xf32>
    %149 = arith.addf %147, %148 : vector<8x8xf32>
    %cst_58 = arith.constant dense<0xFF800000> : vector<8xf32>
    %150 = vector.multi_reduction <maximumf>, %149, %cst_58 [1] : vector<8x8xf32> to vector<8xf32>
    %151 = vector.shape_cast %150 : vector<8xf32> to vector<8x1xf32>
    %152 = vector.broadcast %151 : vector<8x1xf32> to vector<8x8xf32>
    %153 = arith.subf %149, %152 : vector<8x8xf32>
    %154 = math.exp %153 : vector<8x8xf32>
    %cst_59 = arith.constant dense<0.000000e+00> : vector<8xf32>
    %155 = vector.multi_reduction <add>, %154, %cst_59 [1] : vector<8x8xf32> to vector<8xf32>
    %156 = vector.shape_cast %155 : vector<8xf32> to vector<8x1xf32>
    %157 = tpu.reciprocal %156 {approx = true} : vector<8x1xf32> -> vector<8x1xf32>
    %158 = vector.broadcast %157 : vector<8x1xf32> to vector<8x8xf32>
    %159 = arith.mulf %154, %158 : vector<8x8xf32>
    %160 = arith.truncf %159 : vector<8x8xf32> to vector<8x8xbf16>
    %cst_60 = arith.constant dense<0.000000e+00> : vector<8x8xf32>
    %161 = tpu.matmul %160, %145, %cst_60 {dimension_numbers = #tpu.dot_dimension_numbers<[1], [0], [0], [1], [0, 0, 1, 1], [], []>} : vector<8x8xbf16>, vector<8x8xbf16>, vector<8x8xf32> -> vector<8x8xf32>
    %c8_61 = arith.constant 8 : index
    %c16_62 = arith.constant 16 : index
    %162 = vector.load %arg20[%c8_61, %c16_62] : memref<16x32xf32, #tpu.memory_space<vmem>>, vector<8x8xf32>
    tpu.vector_store %arg20[%c8_61, %c16_62], %161 {strides = array<i32>} : memref<16x32xf32, #tpu.memory_space<vmem>>, vector<8x8xf32>,
    %163 = vector.extract_strided_slice %16 {offsets = [8, 56], sizes = [8, 8], strides = [1, 1]} : vector<16x64xbf16> to vector<8x8xbf16>
    %164 = vector.extract_strided_slice %25 {offsets = [8, 24], sizes = [8, 8], strides = [1, 1]} : vector<16x32xbf16> to vector<8x8xbf16>
    %165 = vector.extract_strided_slice %16 {offsets = [8, 24], sizes = [8, 8], strides = [1, 1]} : vector<16x64xbf16> to vector<8x8xbf16>
    %cst_63 = arith.constant dense<0.000000e+00> : vector<8x8xf32>
    %166 = tpu.matmul %165, %163, %cst_63 {dimension_numbers = #tpu.dot_dimension_numbers<[1], [1], [0], [0], [0, 0, 1, 0], [], []>} : vector<8x8xbf16>, vector<8x8xbf16>, vector<8x8xf32> -> vector<8x8xf32>
    %167 = vector.broadcast %105 : vector<1x8xf32> to vector<8x8xf32>
    %168 = arith.addf %166, %167 : vector<8x8xf32>
    %cst_64 = arith.constant dense<0xFF800000> : vector<8xf32>
    %169 = vector.multi_reduction <maximumf>, %168, %cst_64 [1] : vector<8x8xf32> to vector<8xf32>
    %170 = vector.shape_cast %169 : vector<8xf32> to vector<8x1xf32>
    %171 = vector.broadcast %170 : vector<8x1xf32> to vector<8x8xf32>
    %172 = arith.subf %168, %171 : vector<8x8xf32>
    %173 = math.exp %172 : vector<8x8xf32>
    %cst_65 = arith.constant dense<0.000000e+00> : vector<8xf32>
    %174 = vector.multi_reduction <add>, %173, %cst_65 [1] : vector<8x8xf32> to vector<8xf32>
    %175 = vector.shape_cast %174 : vector<8xf32> to vector<8x1xf32>
    %176 = tpu.reciprocal %175 {approx = true} : vector<8x1xf32> -> vector<8x1xf32>
    %177 = vector.broadcast %176 : vector<8x1xf32> to vector<8x8xf32>
    %178 = arith.mulf %173, %177 : vector<8x8xf32>
    %179 = arith.truncf %178 : vector<8x8xf32> to vector<8x8xbf16>
    %cst_66 = arith.constant dense<0.000000e+00> : vector<8x8xf32>
    %180 = tpu.matmul %179, %164, %cst_66 {dimension_numbers = #tpu.dot_dimension_numbers<[1], [0], [0], [1], [0, 0, 1, 1], [], []>} : vector<8x8xbf16>, vector<8x8xbf16>, vector<8x8xf32> -> vector<8x8xf32>
    %c8_67 = arith.constant 8 : index
    %c24_68 = arith.constant 24 : index
    %181 = vector.load %arg20[%c8_67, %c24_68] : memref<16x32xf32, #tpu.memory_space<vmem>>, vector<8x8xf32>
    tpu.vector_store %arg20[%c8_67, %c24_68], %180 {strides = array<i32>} : memref<16x32xf32, #tpu.memory_space<vmem>>, vector<8x8xf32>,
    %c0_69 = arith.constant 0 : index
    %c0_70 = arith.constant 0 : index
    %182 = vector.load %arg20[%c0_69, %c0_70] : memref<16x32xf32, #tpu.memory_space<vmem>>, vector<16x32xf32>
    %183 = arith.truncf %182 : vector<16x32xf32> to vector<16x32xbf16>
    %c0_71 = arith.constant 0 : index
    %c0_72 = arith.constant 0 : index
    %c0_73 = arith.constant 0 : index
    %184 = vector.load %arg9[%c0_71, %c0_72, %c0_73] : memref<1x32x32xbf16, #tpu.memory_space<vmem>>, vector<1x32x32xbf16>
    %185 = vector.shape_cast %184 : vector<1x32x32xbf16> to vector<32x32xbf16>
    %cst_74 = arith.constant dense<0.000000e+00> : vector<16x32xf32>
    %186 = tpu.matmul %183, %185, %cst_74 {dimension_numbers = #tpu.dot_dimension_numbers<[1], [0], [0], [1], [0, 0, 1, 1], [], []>} : vector<16x32xbf16>, vector<32x32xbf16>, vector<16x32xf32> -> vector<16x32xf32>
    %c0_75 = arith.constant 0 : index
    %c0_76 = arith.constant 0 : index
    %c0_77 = arith.constant 0 : index
    %187 = vector.load %arg10[%c0_75, %c0_76, %c0_77] : memref<1x1x32xf32, #tpu.memory_space<vmem>>, vector<1x1x32xf32>
    %188 = vector.shape_cast %187 : vector<1x1x32xf32> to vector<1x32xf32>
    %189 = vector.broadcast %188 : vector<1x32xf32> to vector<16x32xf32>
    %190 = arith.addf %186, %189 : vector<16x32xf32>
    %191 = arith.addf %4, %190 : vector<16x32xf32>
    %c0_78 = arith.constant 0 : index
    %c0_79 = arith.constant 0 : index
    %c0_80 = arith.constant 0 : index
    %192 = vector.load %arg11[%c0_78, %c0_79, %c0_80] : memref<1x1x32xf32, #tpu.memory_space<vmem>>, vector<1x1x32xf32>
    %193 = vector.shape_cast %192 : vector<1x1x32xf32> to vector<1x32xf32>
    %c0_81 = arith.constant 0 : index
    %c0_82 = arith.constant 0 : index
    %c0_83 = arith.constant 0 : index
    %194 = vector.load %arg12[%c0_81, %c0_82, %c0_83] : memref<1x1x32xf32, #tpu.memory_space<vmem>>, vector<1x1x32xf32>
    %195 = vector.shape_cast %194 : vector<1x1x32xf32> to vector<1x32xf32>
    %cst_84 = arith.constant dense<0.000000e+00> : vector<16xf32>
    %196 = vector.multi_reduction <add>, %191, %cst_84 [1] : vector<16x32xf32> to vector<16xf32>
    %197 = vector.shape_cast %196 : vector<16xf32> to vector<16x1xf32>
    %cst_85 = arith.constant 3.200000e+01 : f32
    %198 = vector.broadcast %cst_85 : f32 to vector<16x1xf32>
    %199 = arith.divf %197, %198 : vector<16x1xf32>
    %200 = vector.broadcast %199 : vector<16x1xf32> to vector<16x32xf32>
    %201 = arith.subf %191, %200 : vector<16x32xf32>
    %202 = arith.mulf %201, %201 : vector<16x32xf32>
    %cst_86 = arith.constant dense<0.000000e+00> : vector<16xf32>
    %203 = vector.multi_reduction <add>, %202, %cst_86 [1] : vector<16x32xf32> to vector<16xf32>
    %204 = vector.shape_cast %203 : vector<16xf32> to vector<16x1xf32>
    %cst_87 = arith.constant 3.200000e+01 : f32
    %205 = vector.broadcast %cst_87 : f32 to vector<16x1xf32>
    %206 = arith.divf %204, %205 : vector<16x1xf32>
    %207 = vector.broadcast %199 : vector<16x1xf32> to vector<16x32xf32>
    %208 = arith.subf %191, %207 : vector<16x32xf32>
    %cst_88 = arith.constant 9.99999974E-6 : f32
    %209 = vector.broadcast %cst_88 : f32 to vector<16x1xf32>
    %210 = arith.addf %206, %209 : vector<16x1xf32>
    %211 = math.rsqrt %210 : vector<16x1xf32>
    %212 = vector.broadcast %211 : vector<16x1xf32> to vector<16x32xf32>
    %213 = arith.mulf %208, %212 : vector<16x32xf32>
    %214 = vector.broadcast %193 : vector<1x32xf32> to vector<16x32xf32>
    %215 = arith.mulf %213, %214 : vector<16x32xf32>
    %216 = vector.broadcast %195 : vector<1x32xf32> to vector<16x32xf32>
    %217 = arith.addf %215, %216 : vector<16x32xf32>
    %218 = arith.truncf %217 : vector<16x32xf32> to vector<16x32xbf16>
    %cst_89 = arith.constant 0.000000e+00 : f32
    %219 = vector.broadcast %cst_89 : f32 to vector<16x32xf32>
    %c0_90 = arith.constant 0 : index
    %c0_91 = arith.constant 0 : index
    %c0_92 = arith.constant 0 : index
    %220 = vector.load %arg13[%c0_90, %c0_91, %c0_92] : memref<1x32x64xbf16, #tpu.memory_space<vmem>>, vector<1x32x64xbf16>
    %221 = vector.shape_cast %220 : vector<1x32x64xbf16> to vector<32x64xbf16>
    %cst_93 = arith.constant dense<0.000000e+00> : vector<16x64xf32>
    %222 = tpu.matmul %218, %221, %cst_93 {dimension_numbers = #tpu.dot_dimension_numbers<[1], [0], [0], [1], [0, 0, 1, 1], [], []>} : vector<16x32xbf16>, vector<32x64xbf16>, vector<16x64xf32> -> vector<16x64xf32>
    %c0_94 = arith.constant 0 : index
    %c0_95 = arith.constant 0 : index
    %c0_96 = arith.constant 0 : index
    %223 = vector.load %arg14[%c0_94, %c0_95, %c0_96] : memref<1x1x64xf32, #tpu.memory_space<vmem>>, vector<1x1x64xf32>
    %224 = vector.shape_cast %223 : vector<1x1x64xf32> to vector<1x64xf32>
    %225 = vector.broadcast %224 : vector<1x64xf32> to vector<16x64xf32>
    %226 = arith.addf %222, %225 : vector<16x64xf32>
    %cst_97 = arith.constant 0.000000e+00 : f32
    %227 = vector.broadcast %cst_97 : f32 to vector<16x64xf32>
    %228 = arith.maximumf %226, %227 : vector<16x64xf32>
    %229 = arith.truncf %228 : vector<16x64xf32> to vector<16x64xbf16>
    %c0_98 = arith.constant 0 : index
    %c0_99 = arith.constant 0 : index
    %c0_100 = arith.constant 0 : index
    %230 = vector.load %arg15[%c0_98, %c0_99, %c0_100] : memref<1x64x32xbf16, #tpu.memory_space<vmem>>, vector<1x64x32xbf16>
    %231 = vector.shape_cast %230 : vector<1x64x32xbf16> to vector<64x32xbf16>
    %cst_101 = arith.constant dense<0.000000e+00> : vector<16x32xf32>
    %232 = tpu.matmul %229, %231, %cst_101 {dimension_numbers = #tpu.dot_dimension_numbers<[1], [0], [0], [1], [0, 0, 1, 1], [], []>} : vector<16x64xbf16>, vector<64x32xbf16>, vector<16x32xf32> -> vector<16x32xf32>
    %233 = arith.addf %219, %232 : vector<16x32xf32>
    %c0_102 = arith.constant 0 : index
    %c0_103 = arith.constant 0 : index
    %c0_104 = arith.constant 0 : index
    %234 = vector.load %arg16[%c0_102, %c0_103, %c0_104] : memref<1x1x32xf32, #tpu.memory_space<vmem>>, vector<1x1x32xf32>
    %235 = vector.shape_cast %234 : vector<1x1x32xf32> to vector<1x32xf32>
    %236 = vector.broadcast %235 : vector<1x32xf32> to vector<16x32xf32>
    %237 = arith.addf %233, %236 : vector<16x32xf32>
    %238 = arith.addf %217, %237 : vector<16x32xf32>
    %c0_105 = arith.constant 0 : index
    %c0_106 = arith.constant 0 : index
    %c0_107 = arith.constant 0 : index
    %239 = vector.load %arg17[%c0_105, %c0_106, %c0_107] : memref<1x1x32xf32, #tpu.memory_space<vmem>>, vector<1x1x32xf32>
    %240 = vector.shape_cast %239 : vector<1x1x32xf32> to vector<1x32xf32>
    %c0_108 = arith.constant 0 : index
    %c0_109 = arith.constant 0 : index
    %c0_110 = arith.constant 0 : index
    %241 = vector.load %arg18[%c0_108, %c0_109, %c0_110] : memref<1x1x32xf32, #tpu.memory_space<vmem>>, vector<1x1x32xf32>
    %242 = vector.shape_cast %241 : vector<1x1x32xf32> to vector<1x32xf32>
    %cst_111 = arith.constant dense<0.000000e+00> : vector<16xf32>
    %243 = vector.multi_reduction <add>, %238, %cst_111 [1] : vector<16x32xf32> to vector<16xf32>
    %244 = vector.shape_cast %243 : vector<16xf32> to vector<16x1xf32>
    %cst_112 = arith.constant 3.200000e+01 : f32
    %245 = vector.broadcast %cst_112 : f32 to vector<16x1xf32>
    %246 = arith.divf %244, %245 : vector<16x1xf32>
    %247 = vector.broadcast %246 : vector<16x1xf32> to vector<16x32xf32>
    %248 = arith.subf %238, %247 : vector<16x32xf32>
    %249 = arith.mulf %248, %248 : vector<16x32xf32>
    %cst_113 = arith.constant dense<0.000000e+00> : vector<16xf32>
    %250 = vector.multi_reduction <add>, %249, %cst_113 [1] : vector<16x32xf32> to vector<16xf32>
    %251 = vector.shape_cast %250 : vector<16xf32> to vector<16x1xf32>
    %cst_114 = arith.constant 3.200000e+01 : f32
    %252 = vector.broadcast %cst_114 : f32 to vector<16x1xf32>
    %253 = arith.divf %251, %252 : vector<16x1xf32>
    %254 = vector.broadcast %246 : vector<16x1xf32> to vector<16x32xf32>
    %255 = arith.subf %238, %254 : vector<16x32xf32>
    %cst_115 = arith.constant 9.99999974E-6 : f32
    %256 = vector.broadcast %cst_115 : f32 to vector<16x1xf32>
    %257 = arith.addf %253, %256 : vector<16x1xf32>
    %258 = math.rsqrt %257 : vector<16x1xf32>
    %259 = vector.broadcast %258 : vector<16x1xf32> to vector<16x32xf32>
    %260 = arith.mulf %255, %259 : vector<16x32xf32>
    %261 = vector.broadcast %240 : vector<1x32xf32> to vector<16x32xf32>
    %262 = arith.mulf %260, %261 : vector<16x32xf32>
    %263 = vector.broadcast %242 : vector<1x32xf32> to vector<16x32xf32>
    %264 = arith.addf %262, %263 : vector<16x32xf32>
    %265 = vector.shape_cast %264 : vector<16x32xf32> to vector<2x8x32xf32>
    %c0_116 = arith.constant 0 : index
    %c0_117 = arith.constant 0 : index
    %c0_118 = arith.constant 0 : index
    %266 = vector.load %arg19[%c0_116, %c0_117, %c0_118] : memref<2x8x32xf32, #tpu.memory_space<vmem>>, vector<2x8x32xf32>
    tpu.vector_store %arg19[%c0_116, %c0_117, %c0_118], %265 {strides = array<i32>} : memref<2x8x32xf32, #tpu.memory_space<vmem>>, vector<2x8x32xf32>,
    return
  }
  func.func @transform_0(%arg0: i32, %arg1: i32) -> (i32, i32, i32) {
    %c0_i32 = arith.constant 0 : i32
    %c0_i32_0 = arith.constant 0 : i32
    %c0_i32_1 = arith.constant 0 : i32
    return %arg0, %c0_i32, %c0_i32_0 : i32, i32, i32
  }
  func.func @transform_1(%arg0: i32, %arg1: i32) -> (i32, i32, i32) {
    %c0_i32 = arith.constant 0 : i32
    %c0_i32_0 = arith.constant 0 : i32
    %c0_i32_1 = arith.constant 0 : i32
    return %arg0, %c0_i32, %c0_i32_0 : i32, i32, i32
  }
  func.func @transform_2(%arg0: i32, %arg1: i32) -> (i32, i32, i32) {
    %c0_i32 = arith.constant 0 : i32
    %c0_i32_0 = arith.constant 0 : i32
    %c0_i32_1 = arith.constant 0 : i32
    return %arg0, %c0_i32, %c0_i32_0 : i32, i32, i32
  }
  func.func @transform_3(%arg0: i32, %arg1: i32) -> (i32, i32, i32) {
    %c0_i32 = arith.constant 0 : i32
    %c0_i32_0 = arith.constant 0 : i32
    %c0_i32_1 = arith.constant 0 : i32
    return %arg1, %c0_i32, %c0_i32_0 : i32, i32, i32
  }
  func.func @transform_4(%arg0: i32, %arg1: i32) -> (i32, i32, i32) {
    %c0_i32 = arith.constant 0 : i32
    %c0_i32_0 = arith.constant 0 : i32
    %c0_i32_1 = arith.constant 0 : i32
    return %arg1, %c0_i32, %c0_i32_0 : i32, i32, i32
  }
  func.func @transform_5(%arg0: i32, %arg1: i32) -> (i32, i32, i32) {
    %c0_i32 = arith.constant 0 : i32
    %c0_i32_0 = arith.constant 0 : i32
    %c0_i32_1 = arith.constant 0 : i32
    return %arg1, %c0_i32, %c0_i32_0 : i32, i32, i32
  }
  func.func @transform_6(%arg0: i32, %arg1: i32) -> (i32, i32, i32) {
    %c0_i32 = arith.constant 0 : i32
    %c0_i32_0 = arith.constant 0 : i32
    %c0_i32_1 = arith.constant 0 : i32
    return %arg1, %c0_i32, %c0_i32_0 : i32, i32, i32
  }
  func.func @transform_7(%arg0: i32, %arg1: i32) -> (i32, i32, i32) {
    %c0_i32 = arith.constant 0 : i32
    %c0_i32_0 = arith.constant 0 : i32
    %c0_i32_1 = arith.constant 0 : i32
    return %arg1, %c0_i32, %c0_i32_0 : i32, i32, i32
  }
  func.func @transform_8(%arg0: i32, %arg1: i32) -> (i32, i32, i32) {
    %c0_i32 = arith.constant 0 : i32
    %c0_i32_0 = arith.constant 0 : i32
    %c0_i32_1 = arith.constant 0 : i32
    return %arg1, %c0_i32, %c0_i32_0 : i32, i32, i32
  }
  func.func @transform_9(%arg0: i32, %arg1: i32) -> (i32, i32, i32) {
    %c0_i32 = arith.constant 0 : i32
    %c0_i32_0 = arith.constant 0 : i32
    %c0_i32_1 = arith.constant 0 : i32
    return %arg1, %c0_i32, %c0_i32_0 : i32, i32, i32
  }
  func.func @transform_10(%arg0: i32, %arg1: i32) -> (i32, i32, i32) {
    %c0_i32 = arith.constant 0 : i32
    %c0_i32_0 = arith.constant 0 : i32
    %c0_i32_1 = arith.constant 0 : i32
    return %arg1, %c0_i32, %c0_i32_0 : i32, i32, i32
  }
  func.func @transform_11(%arg0: i32, %arg1: i32) -> (i32, i32, i32) {
    %c0_i32 = arith.constant 0 : i32
    %c0_i32_0 = arith.constant 0 : i32
    %c0_i32_1 = arith.constant 0 : i32
    return %arg1, %c0_i32, %c0_i32_0 : i32, i32, i32
  }
  func.func @transform_12(%arg0: i32, %arg1: i32) -> (i32, i32, i32) {
    %c0_i32 = arith.constant 0 : i32
    %c0_i32_0 = arith.constant 0 : i32
    %c0_i32_1 = arith.constant 0 : i32
    return %arg1, %c0_i32, %c0_i32_0 : i32, i32, i32
  }
  func.func @transform_13(%arg0: i32, %arg1: i32) -> (i32, i32, i32) {
    %c0_i32 = arith.constant 0 : i32
    %c0_i32_0 = arith.constant 0 : i32
    %c0_i32_1 = arith.constant 0 : i32
    return %arg1, %c0_i32, %c0_i32_0 : i32, i32, i32
  }
  func.func @transform_14(%arg0: i32, %arg1: i32) -> (i32, i32, i32) {
    %c0_i32 = arith.constant 0 : i32
    %c0_i32_0 = arith.constant 0 : i32
    %c0_i32_1 = arith.constant 0 : i32
    return %arg1, %c0_i32, %c0_i32_0 : i32, i32, i32
  }
  func.func @transform_15(%arg0: i32, %arg1: i32) -> (i32, i32, i32) {
    %c0_i32 = arith.constant 0 : i32
    %c0_i32_0 = arith.constant 0 : i32
    %c0_i32_1 = arith.constant 0 : i32
    return %arg1, %c0_i32, %c0_i32_0 : i32, i32, i32
  }
  func.func @transform_16(%arg0: i32, %arg1: i32) -> (i32, i32, i32) {
    %c0_i32 = arith.constant 0 : i32
    %c0_i32_0 = arith.constant 0 : i32
    %c0_i32_1 = arith.constant 0 : i32
    return %arg1, %c0_i32, %c0_i32_0 : i32, i32, i32
  }
  func.func @transform_17(%arg0: i32, %arg1: i32) -> (i32, i32, i32) {
    %c0_i32 = arith.constant 0 : i32
    %c0_i32_0 = arith.constant 0 : i32
    %c0_i32_1 = arith.constant 0 : i32
    return %arg0, %c0_i32, %c0_i32_0 : i32, i32, i32
  }
}

</mosaic_0001>

<bundles_post_ra>
// kernel: tpu_custom_call.1
= control target key start
LH: loop header
LB: loop body
LE: loop exit
PB: predicated region body
PF: predicated region fallthrough
CT: control target
= control target key end

     0   :  { %s3743_s0 = inlined_call_operand.hbm [shape: f32[2,8,32], index: 0, kind: input, shape index: {}]   ;;  %s3744_s1 = inlined_call_operand.hbm [shape: f32[2,8,32], index: 1, kind: input, shape index: {}]   ;;  %s3745_s2 = inlined_call_operand.vmem [shape: f32[2,1,8], index: 2, kind: input, shape index: {}]   ;;  %s3746_s3 = inlined_call_operand.vmem [shape: bf16[2,32,64], index: 3, kind: input, shape index: {}]   ;;  %s3747_s4 = inlined_call_operand.vmem [shape: f32[2,1,64], index: 4, kind: input, shape index: {}]   ;;  %s3748_s5 = inlined_call_operand.vmem [shape: bf16[2,32,32], index: 5, kind: input, shape index: {}]   ;;  %s3749_s6 = inlined_call_operand.vmem [shape: f32[2,1,32], index: 6, kind: input, shape index: {}]   ;;  %s3750_s7 = inlined_call_operand.vmem [shape: bf16[2,32,32], index: 7, kind: input, shape index: {}]   ;;  %s3751_s8 = inlined_call_operand.vmem [shape: f32[2,1,32], index: 8, kind: input, shape index: {}]   ;;  %s3752_s9 = inlined_call_operand.vmem [shape: f32[2,1,32], index: 9, kind: input, shape index: {}]   ;;  %s3753_s10 = inlined_call_operand.vmem [shape: f32[2,1,32], index: 10, kind: input, shape index: {}]   ;;  %s3754_s11 = inlined_call_operand.hbm [shape: bf16[2,32,64], index: 11, kind: input, shape index: {}]   ;;  %s3755_s12 = inlined_call_operand.vmem [shape: f32[2,1,64], index: 12, kind: input, shape index: {}]   ;;  %s3756_s13 = inlined_call_operand.vmem [shape: bf16[2,64,32], index: 13, kind: input, shape index: {}]   ;;  %s3757_s14 = inlined_call_operand.vmem [shape: f32[2,1,32], index: 14, kind: input, shape index: {}]   ;;  %s3758_s15 = inlined_call_operand.vmem [shape: f32[2,1,32], index: 15, kind: input, shape index: {}]   ;;  %s3759_s16 = inlined_call_operand.vmem [shape: f32[2,1,32], index: 16, kind: input, shape index: {}]   ;;  %s3760_s17 = inlined_call_operand.hbm [shape: f32[2,8,32], index: 17, kind: output, shape index: {}]  }
   0x1   :  { %3776 = sst [smem:[#allocation20_spill]] %s3743_s0 }
   0x2   :  { %3777 = sst [smem:[#allocation21_spill]] %s3744_s1 }
   0x3   :  { %3778 = sst [smem:[#allocation22_spill]] %s3745_s2 }
   0x4   :  { %3779 = sst [smem:[#allocation23_spill]] %s3746_s3 }
   0x5   :  { %3780 = sst [smem:[#allocation24_spill]] %s3748_s5 }
   0x6   :  { %3781 = sst [smem:[#allocation25_spill]] %s3750_s7 }
   0x7   :  { %3782 = sst [smem:[#allocation26_spill]] %s3751_s8 }
   0x8   :  { %3783 = sst [smem:[#allocation27_spill]] %s3752_s9 }
   0x9   :  { %3784 = sst [smem:[#allocation28_spill]] %s3753_s10 }
   0xa   :  { %3785 = sst [smem:[#allocation29_spill]] %s3754_s11 }
   0xb   :  { %3786 = sst [smem:[#allocation30_spill]] %s3755_s12 }
   0xc   :  { %3787 = sst [smem:[#allocation31_spill]] %s3756_s13 }
   0xd   :  { %3788 = sst [smem:[#allocation32_spill]] %s3757_s14 }
   0xe   :  { %3789 = sst [smem:[#allocation33_spill]] %s3758_s15 }
   0xf   :  { %3790 = sst [smem:[#allocation34_spill]] %s3759_s16 }
  0x10   :  { %3791 = sst [smem:[#allocation35_spill]] %s3760_s17 }
  0x11   :  { %22 = vsyncpa [#allocation4], 0 }
  0x12   :  { %23 = vsyncpa [#allocation7], 0 }
  0x13   :  { %24 = vsyncpa [#allocation5], 0  ;;  %s3187_s24 = smov 0   ;;  %s3189_s25 = smov 0  }
  0x14   :  { %s3191_s26 = smov 0   ;;  %s3193_s27 = smov 0  }
  0x15   :  { %s3195_s28 = smov 0   ;;  %s3197_s29 = smov 0  }
  0x16 LB: > { %3792 = sst [smem:[#allocation14_spill]] %s3058_s25  ;;  %s3216_s0 = sadd.s32 4294967295, %s3074_s29   ;;  %s3074_s29 = sphi %s3197_s29, %s30_s29   ;;  %s3070_s28 = sphi %s3195_s28, %s3844_s28   ;;  %s3066_s27 = sphi %s3193_s27, %s3843_s27   ;;  %s3062_s26 = sphi %s3191_s26, %s3842_s26   ;;  %s3058_s25 = sphi %s3189_s25, %s3841_s25   ;;  %s3054_s24 = sphi %s3187_s24, %s3840_s24  }
  0x17   : > { %3793 = sst [smem:[#allocation15_spill]] %s3062_s26  ;;  %p342_p0 = scmp.ne.s32.totalorder %s3062_s26, %s3058_s25 }
  0x18   : > { %3794 = sst [smem:[#allocation16_spill]] %s3070_s28  ;;  %p343_p1 = scmp.eq.s32.totalorder %s3074_s29, 0 }
  0x19   : > { %3795 = sst [smem:[#allocation17_spill]] %s3074_s29  ;;  %p348_p2 = scmp.ne.s32.totalorder %s3058_s25, %s3054_s24 }
  0x1a   : > { %p3765_p3 = scmp.eq.s32.totalorder %s3216_s0, 0  ;;  %p2484_p4 = scmp.ge.s32.totalorder %s3074_s29, 1 }
  0x1b   : > { %p344_p5 = por %p343_p1, %p342_p0  ;;  %p515_p6 = scmp.lt.s32.totalorder %s3074_s29, 3 }
  0x1c   : > { %p3227_p7 = por %p3765_p3, %p348_p2  ;;  %s3076_s19 = smov [#allocation3]  }
  0x1d   : > { %p3231_p8 = pnand %p2484_p4, %p515_p6  ;;  %s530_s1 = sshll.u32 %s3076_s19, 4  ;;  %s531_s1 = int_to_ptr.vmem [resolvable:$true] %s530_s1 }
  0x1e   : > { %s3796_s30 = scalar_select %p3227_p7, 1, 0 }
  0x1f   : > { %s3797_s18 = scalar_select %p3231_p8, 1, 0 }
  0x20   : > { %p2762_p9 = pneg %p3231_p8  ;;  %p2775_p11 = scmp.lt.s32.totalorder %s3074_s29, 2 }
  0x21   : > { %s3800_s24 = sld [smem:[#allocation20_spill]] }
  0x22   : > { %p3239_p10 = pnand %p2762_p9, %p3765_p3  ;;  %p3244_p12 = pnand %p2775_p11, %p344_p5 }
  0x24   : > { %s3799_s21 = scalar_select %p3244_p12, 1, 0 }
  0x25   : > { %p2902_p0 = pneg %p3239_p10 }
  0x27   : > { %s3801_s17 = smov %s3800_s24  ;;  %s2900_s2 = scalar_lea.hbm %s3800_s24, 256 }
  0x28   : > { %p2901_p13 = scmp.ne.s32.totalorder %s3801_s17, %s2900_s2  ;;  %p2907_p4 = scmp.lt.u32.totalorder %s2900_s2, %s3801_s17 }
  0x2a   : > { %p2903_p1 = pnand %p2902_p0, %p2901_p13 }
  0x2c   : > { %p2904_p2 = pneg %p2903_p1 }
  0x2e   : > { %p2909_p5 = pnand %p2907_p4, %p2904_p2 }
  0x30   : > { %2912 = shalt.err (!%p2909_p5)
}
  0x31   : > { %s2913_s14 = scalar_lea.vmem %s531_s1, 256  ;;  %p2921_p3 = scmp.lt.s32.totalorder %s531_s1, %s531_s1 }
  0x32   : > { %p2914_p6 = scmp.ne.s32.totalorder %s531_s1, %s2913_s14  ;;  %p2922_p7 = scmp.lt.s32.totalorder %s2913_s14, %s2913_s14 }
  0x34   : > { %p2916_p9 = pnand %p2914_p6, %p2902_p0  ;;  %p2923_p8 = por %p2922_p7, %p2921_p3 }
  0x36   : > { %p2917_p11 = pneg %p2916_p9 }
  0x38   : > { %p2924_p12 = pnand %p2923_p8, %p2917_p11 }
  0x3a   : > { %2927 = shalt.err (!%p2924_p12)
}
  0x3b   : > { %s3077_s16 = smov 128   ;;  %s3078_s22 = smov 8  }
  0x3c   : > { %2765 = dma.hbm_to_vmem [thread:$0]  (!%p3239_p10), %s3801_s17, 256, %s531_s1, [#allocation4], %s3077_s16, %s3077_s16, %s3078_s22  }
  0x3d   : > { %s3079_s15 = smov [#allocation6]   ;;  %s3802_s12 = sld [smem:[#allocation21_spill]] }
  0x3e   : > { %s546_s23 = sshll.u32 %s3079_s15, 4  ;;  %s547_s23 = int_to_ptr.vmem [resolvable:$true] %s546_s23 }
  0x43   : > { %s2928_s10 = scalar_lea.hbm %s3802_s12, 256 }
  0x44   : > { %p2929_p3 = scmp.ne.s32.totalorder %s3802_s12, %s2928_s10  ;;  %p2935_p12 = scmp.lt.u32.totalorder %s2928_s10, %s3802_s12 }
  0x46   : > { %p2931_p7 = pnand %p2929_p3, %p2902_p0 }
  0x48   : > { %p2932_p8 = pneg %p2931_p7 }
  0x4a   : > { %p2937_p13 = pnand %p2935_p12, %p2932_p8 }
  0x4c   : > { %2940 = shalt.err (!%p2937_p13)
}
  0x4d   : > { %s2941_s1 = scalar_lea.vmem %s547_s23, 256  ;;  %p2949_p5 = scmp.lt.s32.totalorder %s547_s23, %s547_s23 }
  0x4e   : > { %p2942_p1 = scmp.ne.s32.totalorder %s547_s23, %s2941_s1  ;;  %p2950_p6 = scmp.lt.s32.totalorder %s2941_s1, %s2941_s1 }
  0x50   : > { %p2944_p2 = pnand %p2942_p1, %p2902_p0  ;;  %p2951_p9 = por %p2950_p6, %p2949_p5 }
  0x52   : > { %p2945_p4 = pneg %p2944_p2 }
  0x54   : > { %p2952_p11 = pnand %p2951_p9, %p2945_p4 }
  0x56   : > { %2955 = shalt.err (!%p2952_p11)
}
  0x57   : > { %2768 = dma.hbm_to_vmem [thread:$0]  (!%p3239_p10), %s3802_s12, 256, %s547_s23, [#allocation7], %s3077_s16, %s3077_s16, %s3078_s22  }
  0x58   : > { %s39_s7 = sadd.s32 1, %s3070_s28  ;;  %s335_s8 = sadd.s32 1, %s3062_s26 }
  0x59   : > { %p40_p0 = scmp.ge.s32.totalorder %s39_s7, 2  ;;  %s622_s10 = sand.u32 1, %s3074_s29  }
  0x5a   : > { %s624_s13 = sand.u32 1, %s3062_s26   ;;  %s2554_s15 = sshll.u32 %s3070_s28, 8 }
  0x5b   : > { %s3846_s7 = smov (%p40_p0, %s39_s7), 0  ;;  %s2489_s20 = sshll.u32 %s624_s13, 4 }
  0x5c   : > { %3803 = sst [smem:[#allocation18_spill]] %s3846_s7  ;;  %s332_s24 = ssub.s32 %s3070_s28, %s3846_s7 }
  0x5d   : > { %p333_p3 = scmp.eq.s32.totalorder %s332_s24, 0  ;;  %s3804_s11 = sld [smem:[#allocation29_spill]] }
  0x5e   : > { %s626_s16 = scalar_lea.vmem [#allocation8], %s2489_s20  ;;  %s3309_s9 = scalar_lea.sflag [#allocation4], %s622_s10 }
  0x5f   : > { %s633_s22 = sshll.u32 %s626_s16, 4  ;;  %p3806_p7 = scmp.ne.s32.totalorder %s3799_s21, 0  ;;  %s3307_s22 = int_to_ptr.vmem [resolvable:$true] %s633_s22 }
  0x60   : > { %s3305_s23 = scalar_select %p333_p3, %s3062_s26, %s335_s8  }
  0x61   : > { %p2958_p8 = pneg %p3806_p7 }
  0x62   : > { %3805 = sst [smem:[#allocation19_spill]] %s3305_s23 }
  0x63   : > { %s3302_s1 = scalar_lea.hbm %s3804_s11, %s2554_s15  ;;  %s2961_s24 = scalar_lea.hbm %s3804_s11, 512 }
  0x64   : > { %s2956_s2 = scalar_lea.hbm %s3302_s1, 256  ;;  %p2962_p1 = scmp.lt.u32.totalorder %s3302_s1, %s3804_s11 }
  0x65   : > { %p2957_p10 = scmp.ne.s32.totalorder %s3302_s1, %s2956_s2  ;;  %p2963_p2 = scmp.lt.u32.totalorder %s2961_s24, %s2956_s2 }
  0x66   : > { %p2965_p5 = scmp.lt.u32.totalorder %s2956_s2, %s3302_s1 }
  0x67   : > { %p2959_p12 = pnand %p2958_p8, %p2957_p10  ;;  %p2964_p4 = por %p2963_p2, %p2962_p1 }
  0x69   : > { %p2960_p13 = pneg %p2959_p12  ;;  %p2966_p6 = por %p2965_p5, %p2964_p4 }
  0x6b   : > { %p2967_p9 = pnand %p2966_p6, %p2960_p13 }
  0x6d   : > { %2970 = shalt.err (!%p2967_p9)
}
  0x6e   : > { %s2971_s8 = scalar_lea.vmem %s3307_s22, 256  ;;  %s3080_s10 = smov [#allocation8]  }
  0x6f   : > { %p2972_p11 = scmp.ne.s32.totalorder %s3307_s22, %s2971_s8  ;;  %s2976_s14 = sshll.u32 %s3080_s10, 4  ;;  %s2977_s14 = int_to_ptr.vmem [resolvable:$false] %s2976_s14 }
  0x70   : > { %s2978_s16 = scalar_lea.vmem %s2977_s14, 512  ;;  %p2979_p10 = scmp.lt.s32.totalorder %s3307_s22, %s2977_s14 }
  0x71   : > { %p2974_p0 = pnand %p2972_p11, %p2958_p8  ;;  %p2980_p12 = scmp.lt.s32.totalorder %s2978_s16, %s2971_s8 }
  0x73   : > { %p2975_p3 = pneg %p2974_p0  ;;  %p2981_p1 = por %p2980_p12, %p2979_p10 }
  0x75   : > { %p2982_p2 = pnand %p2981_p1, %p2975_p3 }
  0x77   : > { %2985 = shalt.err (!%p2982_p2)
}
  0x78   : > { %s3081_s2 = smov 64   ;;  %s3082_s13 = smov 4  }
  0x79   : > { %2772 = dma.hbm_to_vmem [thread:$0]  (!%p3806_p7), %s3302_s1, 256, %s3307_s22, %s3309_s9, %s3081_s2, %s3081_s2, %s3082_s13  }
  0x7a   : > { %p3807_p8 = scmp.ne.s32.totalorder %s3797_s18, 0 }
  0x7b   : > { %p3808_p13 = scmp.eq.s32.totalorder (!%p3807_p8), %s3216_s0, 0 }
  0x7c   : > { %677 = sbr.rel (%p3807_p8) target bundleno = 2780 (0xadc), region = 88 }
  0x83   : > { %3037 = dma.done.wait (%p3808_p13), [#allocation4], 256   ;;  %p3809_p4 = pmov %p3808_p13 }
  0x85   : > { %3039 = vsyncadd (%p3809_p4), [#allocation4], 4294967040  ;;  %p3810_p5 = pmov %p3809_p4 }
  0x86   : > { %p3811_p6 = pmov %p3809_p4 }
  0x87   : > { %3041 = dma.done.wait (%p3810_p5), [#allocation7], 256  }
  0x88   : > { %3043 = vsyncadd (%p3811_p6), [#allocation7], 4294967040  ;;  %s687_s21 = sand.u32 1, %s3216_s0   ;;  %s689_s1 = sand.u32 1, %s3058_s25  }
  0x89   : > { %s3349_s22 = sshll.u32 %s689_s1, 4  ;;  %s688_s18 = scalar_lea.sflag [#allocation4], %s687_s21 }
  0x8a   : > { %p3812_p7 = scmp.ne.s32.totalorder %s3796_s30, 0 }
  0x8c   : > { %3045 = dma.done.wait (%p3812_p7), %s688_s18, 256  }
  0x8d   : > { %3047 = vsyncadd (%p3812_p7), %s688_s18, 4294967040  ;;  %p795_p9 = scmp.lt.s32.totalorder %s3066_s27, 1  ;;  %s3813_s3 = sld [smem:[#allocation23_spill]] }
  0x8e   : > { %s3814_s5 = sld [smem:[#allocation24_spill]]  ;;  %s3815_s12 = sld [smem:[#allocation25_spill]] }
  0x8f   : > { %s3358_s15 = scalar_select %p795_p9, %s3066_s27, 1 }
  0x90   : > { %s3816_s19 = sld [smem:[#allocation26_spill]]  ;;  %s3819_s1 = sld [smem:[#allocation30_spill]] }
  0x91   : > { %s2555_s24 = sshll.u32 %s3358_s15, 4  ;;  %s2558_s25 = sshll.u32 %s3358_s15, 5 }
  0x92   : > { %s3820_s9 = sld [smem:[#allocation32_spill]]  ;;  %s3822_s10 = sld [smem:[#allocation33_spill]] }
  0x93   : > { %s799_s14 = scalar_lea.vmem %s3813_s3, %s2555_s24  ;;  %s3823_s2 = sld [smem:[#allocation34_spill]] }
  0x94   : > { %s3371_s13 = scalar_lea.vmem %s3814_s5, %s2555_s24  ;;  %s3380_s17 = scalar_lea.vmem %s3815_s12, %s2555_s24 }
  0x95   : > { %p2504_p11 = scmp.ne.s32.totalorder %s3066_s27, 0 }
  0x96   : > { %s818_s7 = scalar_lea.vmem %s3816_s19, %s3358_s15  ;;  %s827_s18 = scalar_lea.vmem %s3819_s1, %s3358_s15  ;;  %v848_v0 = vld [vmem:[#allocation3] sm:$0xff] (!%p2504_p11)  ;;  %vm850_vm0 = vcmask (!%p2504_p11), 261120   ;;  %v849_v1 = vld [vmem:[#allocation3 + $0x8] sm:$0xff] (!%p2504_p11) }
  0x97   : > { %s3821_s19 = sld [smem:[#allocation31_spill]]  ;;  %847 = sbr.rel (%p2504_p11) target bundleno = 158 (0x9e), region = 104  ;;  %851 = vst.msk [vmem:[#allocation9] sm:$0xff] (!%p2504_p11), %vm850_vm0, %v848_v0  ;;  %852 = vst.msk [vmem:[#allocation9 + $0x8] sm:$0xff] (!%p2504_p11), %vm850_vm0, %v849_v1 }
  0x98   : > { %s835_s24 = scalar_lea.vmem %s3820_s9, %s3358_s15  ;;  %s838_s28 = scalar_lea.vmem %s3822_s10, %s3358_s15 }
  0x99   : > { %s841_s23 = scalar_lea.vmem %s3823_s2, %s3358_s15 }
  0x9d   : > { %s3406_s30 = scalar_lea.vmem %s3821_s19, %s2558_s25 }
  0x9e PF: > { %v2848_v2 = vld [vmem:[%s799_s14] sm:$0xff]   ;;  %v3083_v3 = vmov 0.0   ;;  %v2849_v4 = vld [vmem:[%s799_s14 + $0x8] sm:$0xff]   ;;  %vm3084_vm1 = vmmov 0   ;;  %v3421_v5 = vld [vmem:[#allocation9] sm:$0xff]  ;;  %vm883_vm2 = vcmask 261120   ;;  %s3824_s27 = scalar_lea.vmem %s3747_s4, %s3358_s15  ;;  %s3826_s5 = scalar_lea.vmem %s3749_s6, %s3358_s15 }
  0x9f   : > { %2608 = vmatprep.subr.bf16.mxu1 %v3083_v3  ;;  %2624 = vmatprep.subr.bf16.mxu0 %v3083_v3  ;;  %v3423_v6 = vld [vmem:[#allocation9 + $0x8] sm:$0xff]  ;;  %v855_v7 = vld [vmem:[#allocation6] sm:$0xff]  ;;  %v856_v8 = vld [vmem:[#allocation6 + $0x8] sm:$0xff]  ;;  %s3085_s29 = smov 120   ;;  %s3086_s14 = smov 96   ;;  %vm1008_vm3 = vcmask 64512  }
  0xa0   : > { %2609 = vmatpush3.bf16.msra.mxu1 %v2848_v2  ;;  %2612 = vmatprep.mubr.msk.bf16.mxu1 %vm3084_vm1, %v3083_v3  ;;  %v857_v9 = vadd.f32 %v855_v7, %v3421_v5  ;;  %v858_v10 = vadd.f32 %v856_v8, %v3423_v6  ;;  %v2505_v12 = vld [vmem:[%s3824_s27] ss:$0 sm:$0xff]  ;;  %s3087_s21 = smov 80   ;;  %s3088_s1 = smov 88   ;;  %v2851_v22 = vld [vmem:[%s3371_s13 + $0x8] sm:$0xff]   ;;  %v929_v23 = vpack.c.bf16 %v3423_v6, %v3421_v5  ;;  %vm1070_vm4 = vcmask 1043456  }
  0xa1   : > { %2610 = vmatprep.subr.bf16.mxu1 %v3083_v3  ;;  %2626 = vmatprep.mubr.msk.bf16.mxu0 %vm3084_vm1, %v3083_v3  ;;  %s3089_s11 = smov 72   ;;  %s3090_s12 = smov 112   ;;  %v2850_v21 = vld [vmem:[%s3371_s13] sm:$0xff]   ;;  %vm1230_vm5 = vcmask 130112   ;;  %vm1346_vm6 = vcmask 195712   ;;  %vm1462_vm7 = vcmask 261312  }
  0xa2   : > { %v859_v11 = vpack.c.bf16 %v858_v10, %v857_v9  ;;  %s3091_s9 = smov 104   ;;  %s3825_s19 = sld [smem:[#allocation22_spill]]  ;;  %vm2153_vm8 = vcmask 523264  }
  0xa3   : > { %s3092_s2 = smov 8   ;;  %s3093_s25 = smov 16  }
  0xa4   : > { %2611 = vmatpush3.bf16.msra.mxu1 %v2849_v4  ;;  %s3094_s26 = smov 24   ;;  %s3832_s13 = sld [smem:[#allocation28_spill]] }
  0xa5   : > { %2616 = vmatprep.subr.bf16.mxu1 %v3083_v3  ;;  %p2778_p0 = scmp.eq.s32.totalorder %s3216_s0, 1 }
  0xa7   : > { %2613 = vmatmul.mubr.msk.bf16.vlgmr.msra.gmra.mrb[0].mxu1 %vm883_vm2, %v859_v11 }
  0xa8   : > { %2620 = vmatprep.mubr.msk.bf16.mxu1 %vm3084_vm1, %v3083_v3  ;;  %2617 = vmatpush3.bf16.msra.mxu1 %v2850_v21  ;;  %v2513_v46 = vld [vmem:[%s3825_s19] ss:$0 sm:$0xff]  ;;  %v2523_v10 = vld [vmem:[%s3825_s19 + $0x1] ss:$0 sm:$0xff] }
  0xa9   : > { %2618 = vmatprep.subr.bf16.mxu1 %v3083_v3 }
  0xaa   : > { %s3833_s20 = scalar_lea.vmem %s3832_s13, %s3358_s15 }
  0xac   : > { %2619 = vmatpush3.bf16.msra.mxu1 %v2851_v22 }
  0xad   : > { %2630 = vmatprep.subr.bf16.mxu1 %v3083_v3 }
  0xaf   : > { %2621 = vmatmul.mubr.msk.bf16.vlgmr.msra.gmra.mrb[4].mxu1 %vm883_vm2, %v929_v23 }
  0xb0   : > { %2632 = vmatprep.mubr.msk.bf16.mxu1 %vm3084_vm1, %v3083_v3 }
 0x17a   : > { %v921_v13 = vpop.f32.mrb[0].mxu1 }
 0x17b   : > { %v2614_v14 = vpop.f32.mrb[1].mxu1  ;;  %v922_v16 = vadd.f32 %v2505_v12, %v921_v13 }
 0x17c   : > { %v924_v15 = vpop.f32.mrb[2].mxu1 }
 0x17d   : > { %v925_v17 = vadd.f32 %v2505_v12, %v924_v15  ;;  %v2615_v18 = vpop.f32.mrb[3].mxu1 }
 0x17f   : > { %v928_v19 = vpack.c.bf16 %v925_v17, %v922_v16 }
 0x181   : > { %1115 = vrot.lane.b32.xlu1 %v928_v19, %s3085_s29  ;;  %1006 = vrot.lane.b32.xlu0 %v928_v19, %s3086_s14  ;;  %v1472_v20 = vrot.slane %v928_v19, 4 }
 0x185   : > { %1234 = vrot.lane.b32.xlu1 %v928_v19, %s3087_s21  ;;  %1117 = vrot.lane.b32.xlu0 %v928_v19, %s3088_s1 }
 0x189   : > { %1350 = vrot.lane.b32.xlu1 %v928_v19, %s3089_s11  ;;  %1232 = vrot.lane.b32.xlu0 %v928_v19, %s3090_s12 }
 0x18d   : > { %1348 = vrot.lane.b32.xlu0 %v928_v19, %s3091_s9  ;;  %1473 = vrot.lane.b32.xlu1 %v1472_v20, %s3086_s14 }
 0x191   : > { %1583 = vrot.lane.b32.xlu0 %v1472_v20, %s3088_s1  ;;  %1581 = vrot.lane.b32.xlu1 %v1472_v20, %s3085_s29  ;;  %s3830_s1 = sld [smem:[#allocation27_spill]] }
 0x195   : > { %1698 = vrot.lane.b32.xlu0 %v1472_v20, %s3087_s21  ;;  %1696 = vrot.lane.b32.xlu1 %v1472_v20, %s3090_s12 }
 0x199   : > { %1813 = vrot.lane.b32.xlu0 %v1472_v20, %s3089_s11  ;;  %1811 = vrot.lane.b32.xlu1 %v1472_v20, %s3091_s9  ;;  %s3831_s11 = scalar_lea.vmem %s3830_s1, %s3358_s15 }
 0x1f3   : > { %v1007_v24 = vpop.permute.xlu0 %1006  ;;  %v1116_v27 = vpop.permute.xlu1 %1115 }
 0x1f4   : > { %v1013_v25 = vsel %vm1008_vm3, %v1007_v24, 0 }
 0x1f5   : > { %2625 = vmatpush3.bf16.xpose.msra.mxu0 %v1013_v25 }
 0x1f6   : > { %2636 = vmatprep.subr.bf16.mxu0 %v3083_v3 }
 0x1f7   : > { %v1118_v26 = vpop.permute.xlu0 %1117  ;;  %v1235_v29 = vpop.permute.xlu1 %1234 }
 0x1f8   : > { %v1123_v28 = vsel %vm1008_vm3, %v1118_v26, 0  ;;  %v1240_v30 = vsel %vm1008_vm3, %v1235_v29, 0 }
 0x1fb   : > { %v1351_v31 = vpop.permute.xlu1 %1350  ;;  %v1233_v32 = vpop.permute.xlu0 %1232 }
 0x1fc   : > { %2627 = vmatmul.mubr.msk.bf16.vlgmr.msra.gmra.mrb[0].mxu0 %vm1008_vm3, %v928_v19  ;;  %v1356_v33 = vsel %vm1008_vm3, %v1351_v31, 0 }
 0x1fd   : > { %2637 = vmatpush3.bf16.xpose.msra.mxu0 %v1123_v28  ;;  %2638 = vmatprep.mubr.msk.bf16.mxu0 %vm3084_vm1, %v3083_v3 }
 0x1fe   : > { %2648 = vmatprep.subr.bf16.mxu0 %v3083_v3 }
 0x1ff   : > { %v1474_v34 = vpop.permute.xlu1 %1473  ;;  %v1349_v35 = vpop.permute.xlu0 %1348 }
 0x200   : > { %v1479_v36 = vsel %vm1008_vm3, %v1474_v34, 0 }
 0x203   : > { %v1584_v37 = vpop.permute.xlu0 %1583  ;;  %v1582_v40 = vpop.permute.xlu1 %1581 }
 0x204   : > { %2639 = vmatmul.mubr.msk.bf16.vlgmr.msra.gmra.mrb[4].mxu0 %vm1008_vm3, %v1116_v27  ;;  %v1589_v38 = vsel %vm1008_vm3, %v1584_v37, 0 }
 0x205   : > { %2649 = vmatpush3.bf16.xpose.msra.mxu0 %v1240_v30  ;;  %2650 = vmatprep.mubr.msk.bf16.mxu0 %vm3084_vm1, %v3083_v3 }
 0x206   : > { %2660 = vmatprep.subr.bf16.mxu0 %v3083_v3 }
 0x207   : > { %v1699_v39 = vpop.permute.xlu0 %1698  ;;  %v1697_v43 = vpop.permute.xlu1 %1696 }
 0x208   : > { %v1704_v41 = vsel %vm1008_vm3, %v1699_v39, 0 }
 0x20b   : > { %v1814_v42 = vpop.permute.xlu0 %1813  ;;  %v1812_v45 = vpop.permute.xlu1 %1811 }
 0x20c   : > { %2651 = vmatmul.mubr.msk.bf16.vlgmr.msra.gmra.mrb[8].mxu0 %vm1008_vm3, %v1233_v32  ;;  %v1819_v44 = vsel %vm1008_vm3, %v1814_v42, 0  ;;  %v990_v32 = vpop.f32.mrb[4].mxu1 }
 0x20d   : > { %2661 = vmatpush3.bf16.xpose.msra.mxu0 %v1356_v33  ;;  %2662 = vmatprep.mubr.msk.bf16.mxu0 %vm3084_vm1, %v3083_v3  ;;  %v2622_v34 = vpop.f32.mrb[5].mxu1 }
 0x20e   : > { %2672 = vmatprep.subr.bf16.mxu0 %v3083_v3  ;;  %v993_v37 = vpop.f32.mrb[6].mxu1 }
 0x20f   : > { %v2623_v39 = vpop.f32.mrb[7].mxu1 }
 0x214   : > { %2663 = vmatmul.mubr.msk.bf16.vlgmr.msra.gmra.mrb[12].mxu0 %vm1008_vm3, %v1349_v35 }
 0x215   : > { %2673 = vmatpush3.bf16.xpose.msra.mxu0 %v1479_v36  ;;  %2674 = vmatprep.mubr.msk.bf16.mxu0 %vm3084_vm1, %v3083_v3 }
 0x216   : > { %2684 = vmatprep.subr.bf16.mxu0 %v3083_v3 }
 0x21c   : > { %2675 = vmatmul.mubr.msk.bf16.vlgmr.msra.gmra.mrb[16].mxu0 %vm1008_vm3, %v1472_v20 }
 0x21d   : > { %2685 = vmatpush3.bf16.xpose.msra.mxu0 %v1589_v38  ;;  %2686 = vmatprep.mubr.msk.bf16.mxu0 %vm3084_vm1, %v3083_v3  ;;  %v2509_v38 = vld [vmem:[%s3826_s5] ss:$0 sm:$0xff] }
 0x21e   : > { %2696 = vmatprep.subr.bf16.mxu0 %v3083_v3 }
 0x224   : > { %2687 = vmatmul.mubr.msk.bf16.vlgmr.msra.gmra.mrb[20].mxu0 %vm1008_vm3, %v1582_v40  ;;  %v991_v40 = vadd.f32 %v2509_v38, %v990_v32 }
 0x225   : > { %2697 = vmatpush3.bf16.xpose.msra.mxu0 %v1704_v41  ;;  %2698 = vmatprep.mubr.msk.bf16.mxu0 %vm3084_vm1, %v3083_v3  ;;  %v994_v41 = vadd.f32 %v2509_v38, %v993_v37 }
 0x226   : > { %2708 = vmatprep.subr.bf16.mxu0 %v3083_v3 }
 0x227   : > { %v3537_v42 = vpack.c.bf16 %v994_v41, %v991_v40 }
 0x22c   : > { %2699 = vmatmul.mubr.msk.bf16.vlgmr.msra.gmra.mrb[24].mxu0 %vm1008_vm3, %v1697_v43  ;;  %v1072_v43 = vsel %vm1070_vm4, %v3537_v42, 0 }
 0x22d   : > { %2709 = vmatpush3.bf16.xpose.msra.mxu0 %v1819_v44  ;;  %2710 = vmatprep.mubr.msk.bf16.mxu0 %vm3084_vm1, %v3083_v3 }
 0x22e   : > { %2720 = vmatprep.subr.bf16.mxu0 %v3083_v3  ;;  %2631 = vmatpush3.bf16.msra.mxu1 %v1072_v43 }
 0x22f   : > { %2642 = vmatprep.subr.bf16.mxu1 %v3083_v3 }
 0x234   : > { %2711 = vmatmul.mubr.msk.bf16.vlgmr.msra.gmra.mrb[28].mxu0 %vm1008_vm3, %v1812_v45 }
 0x235   : > { %2724 = vmatprep.mubr.msk.bf16.mxu0 %vm3084_vm1, %v3083_v3 }
 0x2cf   : > { %v1049_v47 = vpop.f32.mrb[0].mxu0 }
 0x2d0   : > { %v3497_v48 = vadd.f32 %v2513_v46, %v1049_v47  ;;  %v2628_v49 = vpop.f32.mrb[1].mxu0 }
 0x2d1   : > { %v1052_v50 = vpop.f32.mrb[2].mxu0 }
 0x2d2   : > { %v2629_v51 = vpop.f32.mrb[3].mxu0  ;;  %v1055_v52 = vsel %vm1008_vm3, %v3497_v48, -inf }
 0x2d3   : > { %1056 = vmax.xlane.f32.xlu0 %v1055_v52 }
 0x2d7   : > { %v1159_v53 = vpop.f32.mrb[4].mxu0 }
 0x2d8   : > { %v3501_v54 = vadd.f32 %v2513_v46, %v1159_v53  ;;  %v2640_v55 = vpop.f32.mrb[5].mxu0 }
 0x2d9   : > { %v1162_v56 = vpop.f32.mrb[6].mxu0 }
 0x2da   : > { %v2641_v57 = vpop.f32.mrb[7].mxu0  ;;  %v1165_v58 = vsel %vm1008_vm3, %v3501_v54, -inf }
 0x2db   : > { %1166 = vmax.xlane.f32.xlu1 %v1165_v58 }
 0x2df   : > { %v1276_v59 = vpop.f32.mrb[8].mxu0 }
 0x2e0   : > { %v3505_v60 = vadd.f32 %v2513_v46, %v1276_v59  ;;  %v2652_v61 = vpop.f32.mrb[9].mxu0 }
 0x2e1   : > { %v1279_v62 = vpop.f32.mrb[10].mxu0 }
 0x2e2   : > { %v2653_v63 = vpop.f32.mrb[11].mxu0  ;;  %v1282_v0 = vsel %vm1008_vm3, %v3505_v60, -inf }
 0x2e3   : > { %1283 = vmax.xlane.f32.xlu0 %v1282_v0 }
 0x2e7   : > { %v1392_v1 = vpop.f32.mrb[12].mxu0 }
 0x2e8   : > { %v3509_v2 = vadd.f32 %v2513_v46, %v1392_v1  ;;  %v2664_v4 = vpop.f32.mrb[13].mxu0 }
 0x2e9   : > { %v1395_v7 = vpop.f32.mrb[14].mxu0 }
 0x2ea   : > { %v2665_v8 = vpop.f32.mrb[15].mxu0  ;;  %v1398_v9 = vsel %vm1008_vm3, %v3509_v2, -inf }
 0x2eb   : > { %1399 = vmax.xlane.f32.xlu0 %v1398_v9 }
 0x2ef   : > { %v1515_v11 = vpop.f32.mrb[16].mxu0 }
 0x2f0   : > { %v3516_v12 = vadd.f32 %v2523_v10, %v1515_v11  ;;  %v2676_v13 = vpop.f32.mrb[17].mxu0 }
 0x2f1   : > { %v1518_v14 = vpop.f32.mrb[18].mxu0 }
 0x2f2   : > { %v2677_v15 = vpop.f32.mrb[19].mxu0  ;;  %v1521_v16 = vsel %vm1008_vm3, %v3516_v12, -inf }
 0x2f3   : > { %1522 = vmax.xlane.f32.xlu1 %v1521_v16 }
 0x2f7   : > { %v1625_v17 = vpop.f32.mrb[20].mxu0 }
 0x2f8   : > { %v3520_v18 = vadd.f32 %v2523_v10, %v1625_v17  ;;  %v2688_v19 = vpop.f32.mrb[21].mxu0 }
 0x2f9   : > { %v1628_v20 = vpop.f32.mrb[22].mxu0 }
 0x2fa   : > { %v2689_v21 = vpop.f32.mrb[23].mxu0  ;;  %v1631_v22 = vsel %vm1008_vm3, %v3520_v18, -inf }
 0x2fb   : > { %1632 = vmax.xlane.f32.xlu0 %v1631_v22 }
 0x2ff   : > { %v1740_v23 = vpop.f32.mrb[24].mxu0 }
 0x300   : > { %v3524_v24 = vadd.f32 %v2523_v10, %v1740_v23  ;;  %v2700_v25 = vpop.f32.mrb[25].mxu0  ;;  %v1533_v23 = vrot.slane %v3537_v42, 4 }
 0x301   : > { %v1743_v26 = vpop.f32.mrb[26].mxu0 }
 0x302   : > { %v2701_v27 = vpop.f32.mrb[27].mxu0  ;;  %v1746_v28 = vsel %vm1008_vm3, %v3524_v24, -inf }
 0x303   : > { %1747 = vmax.xlane.f32.xlu1 %v1746_v28 }
 0x307   : > { %v1855_v29 = vpop.f32.mrb[28].mxu0 }
 0x308   : > { %v3528_v30 = vadd.f32 %v2523_v10, %v1855_v29  ;;  %v2712_v31 = vpop.f32.mrb[29].mxu0 }
 0x309   : > { %v1858_v33 = vpop.f32.mrb[30].mxu0 }
 0x30a   : > { %v2713_v35 = vpop.f32.mrb[31].mxu0  ;;  %v1861_v36 = vsel %vm1008_vm3, %v3528_v30, -inf }
 0x30b   : > { %1862 = vmax.xlane.f32.xlu0 %v1861_v36 }
 0x360   : > { %v1057_v44 = vpop.xlane.xlu0 %1056 }
 0x361   : > { %v1058_v45 = vsub.f32 %v3497_v48, %v1057_v44 }
 0x363   : > { %v1059_v46 = vmul.f32 1.442695, %v1058_v45 }
 0x365   : > { %2860 = vpow2.f32 %v1059_v46  ;;  %v1538_v46 = vsel %vm1070_vm4, %v1533_v23, 0 }
 0x368   : > { %v1167_v47 = vpop.xlane.xlu1 %1166 }
 0x369   : > { %v1168_v49 = vsub.f32 %v3501_v54, %v1167_v47 }
 0x36b   : > { %v1169_v50 = vmul.f32 1.442695, %v1168_v49 }
 0x36d   : > { %2862 = vpow2.f32 %v1169_v50 }
 0x36f   : > { %v2861_v51 = vpop.eup %2860 }
 0x370   : > { %v1284_v52 = vpop.xlane.xlu0 %1283  ;;  %v1061_v53 = vsel %vm1008_vm3, %v2861_v51, 0.0 }
 0x371   : > { %v1285_v55 = vsub.f32 %v3505_v60, %v1284_v52  ;;  %1062 = vadd.xlane.f32.xlu1 %v1061_v53 }
 0x373   : > { %v1286_v56 = vmul.f32 1.442695, %v1285_v55 }
 0x375   : > { %2864 = vpow2.f32 %v1286_v56 }
 0x377   : > { %v2863_v57 = vpop.eup %2862 }
 0x378   : > { %v1400_v58 = vpop.xlane.xlu0 %1399  ;;  %v1171_v48 = vsel %vm1008_vm3, %v2863_v57, 0.0 }
 0x379   : > { %v1401_v59 = vsub.f32 %v3509_v2, %v1400_v58  ;;  %1172 = vadd.xlane.f32.xlu0 %v1171_v48 }
 0x37b   : > { %v1402_v61 = vmul.f32 1.442695, %v1401_v59 }
 0x37d   : > { %2866 = vpow2.f32 %v1402_v61 }
 0x37f   : > { %v3548_v54 = vpop.eup %2864 }
 0x380   : > { %v1288_v62 = vsel %vm1008_vm3, %v3548_v54, 0.0  ;;  %v1523_v0 = vpop.xlane.xlu1 %1522 }
 0x381   : > { %1289 = vadd.xlane.f32.xlu1 %v1288_v62  ;;  %v1524_v1 = vsub.f32 %v3516_v12, %v1523_v0 }
 0x383   : > { %v1525_v8 = vmul.f32 1.442695, %v1524_v1 }
 0x385   : > { %2868 = vpow2.f32 %v1525_v8 }
 0x387   : > { %v3552_v63 = vpop.eup %2866 }
 0x388   : > { %v1404_v60 = vsel %vm1008_vm3, %v3552_v63, 0.0  ;;  %v1633_v2 = vpop.xlane.xlu0 %1632 }
 0x389   : > { %1405 = vadd.xlane.f32.xlu0 %v1404_v60  ;;  %v1634_v7 = vsub.f32 %v3520_v18, %v1633_v2 }
 0x38b   : > { %v1635_v11 = vmul.f32 1.442695, %v1634_v7 }
 0x38d   : > { %2870 = vpow2.f32 %v1635_v11 }
 0x38f   : > { %v3566_v16 = vpop.eup %2868 }
 0x390   : > { %v1748_v4 = vpop.xlane.xlu1 %1747  ;;  %v1527_v17 = vsel %vm1008_vm3, %v3566_v16, 0.0 }
 0x391   : > { %v1749_v9 = vsub.f32 %v3524_v24, %v1748_v4 }
 0x392   : > { %1294 = vrot.lane.b32.xlu1 %v3537_v42, %s3090_s12 }
 0x393   : > { %v1750_v13 = vmul.f32 1.442695, %v1749_v9 }
 0x395   : > { %2872 = vpow2.f32 %v1750_v13 }
 0x396   : > { %1410 = vrot.lane.b32.xlu1 %v3537_v42, %s3091_s9 }
 0x397   : > { %v3568_v12 = vpop.eup %2870 }
 0x398   : > { %v1863_v10 = vpop.xlane.xlu0 %1862  ;;  %v1637_v19 = vsel %vm1008_vm3, %v3568_v12, 0.0 }
 0x399   : > { %v1864_v14 = vsub.f32 %v3528_v30, %v1863_v10 }
 0x39b   : > { %v1865_v15 = vmul.f32 1.442695, %v1864_v14 }
 0x39d   : > { %2874 = vpow2.f32 %v1865_v15 }
 0x39f   : > { %1178 = vrot.lane.b32.xlu0 %v3537_v42, %s3085_s29  ;;  %v3572_v18 = vpop.eup %2872 }
 0x3a0   : > { %v1752_v20 = vsel %vm1008_vm3, %v3572_v18, 0.0 }
 0x3a7   : > { %v3578_v21 = vpop.eup %2874 }
 0x3a8   : > { %v1867_v22 = vsel %vm1008_vm3, %v3578_v21, 0.0 }
 0x3ba   : > { %1528 = vadd.xlane.f32.xlu1 %v1527_v17 }
 0x3be   : > { %1638 = vadd.xlane.f32.xlu1 %v1637_v19  ;;  %1753 = vadd.xlane.f32.xlu0 %v1752_v20 }
 0x3c2   : > { %1868 = vadd.xlane.f32.xlu1 %v1867_v22 }
 0x3d3   : > { %1758 = vrot.lane.b32.xlu1 %v1533_v23, %s3090_s12 }
 0x3d4   : > { %1643 = vrot.lane.b32.xlu0 %v1533_v23, %s3085_s29  ;;  %s3095_s29 = smov [#allocation9]  }
 0x3d8   : > { %1873 = vrot.lane.b32.xlu0 %v1533_v23, %s3091_s9 }
 0x3fe   : > { %v1063_v24 = vpop.xlane.xlu1 %1062 }
 0x3ff   : > { %2876 = vrcp.f32 %v1063_v24 }
 0x406   : > { %v1173_v26 = vpop.xlane.xlu0 %1172 }
 0x407   : > { %2878 = vrcp.f32 %v1173_v26 }
 0x409   : > { %v2877_v25 = vpop.eup %2876 }
 0x40a   : > { %v1065_v27 = vmul.f32 %v2877_v25, %v2861_v51 }
 0x40c   : > { %v1066_v28 = vpack.c.bf16 %v1065_v27, %v1065_v27 }
 0x40e   : > { %2633 = vmatmul.mubr.msk.bf16.vlgmr.msra.gmra.mrb[8].mxu1 %vm1008_vm3, %v1066_v28  ;;  %v1290_v29 = vpop.xlane.xlu1 %1289 }
 0x40f   : > { %2644 = vmatprep.mubr.msk.bf16.mxu1 %vm3084_vm1, %v3083_v3  ;;  %2880 = vrcp.f32 %v1290_v29 }
 0x411   : > { %v2879_v30 = vpop.eup %2878 }
 0x412   : > { %v1175_v32 = vmul.f32 %v2879_v30, %v2863_v57  ;;  %v1295_v35 = vpop.permute.xlu1 %1294 }
 0x413   : > { %v1300_v38 = vsel %vm1070_vm4, %v1295_v35, 0 }
 0x414   : > { %v1176_v36 = vpack.c.bf16 %v1175_v32, %v1175_v32  ;;  %v2852_v32 = vld [vmem:[%s3380_s17] sm:$0xff]  }
 0x415   : > { %2721 = vmatpush3.bf16.msra.mxu0 %v2852_v32  ;;  %v2538_v32 = vld [vmem:[%s827_s18] ss:$0 sm:$0xff] }
 0x416   : > { %v1406_v31 = vpop.xlane.xlu0 %1405  ;;  %v1411_v40 = vpop.permute.xlu1 %1410  ;;  %2722 = vmatprep.subr.bf16.mxu0 %v3083_v3 }
 0x417   : > { %2882 = vrcp.f32 %v1406_v31  ;;  %v1416_v43 = vsel %vm1070_vm4, %v1411_v40, 0 }
 0x419   : > { %v2881_v37 = vpop.eup %2880 }
 0x41a   : > { %v1179_v33 = vpop.permute.xlu0 %1178  ;;  %v1292_v39 = vmul.f32 %v2881_v37, %v3548_v54 }
 0x41b   : > { %v1184_v34 = vsel %vm1070_vm4, %v1179_v33, 0  ;;  %v2853_v33 = vld [vmem:[%s3380_s17 + $0x8] sm:$0xff]  }
 0x41c   : > { %2643 = vmatpush3.bf16.msra.mxu1 %v1184_v34  ;;  %v1293_v41 = vpack.c.bf16 %v1292_v39, %v1292_v39  ;;  %2723 = vmatpush3.bf16.msra.mxu0 %v2853_v33 }
 0x41d   : > { %2654 = vmatprep.subr.bf16.mxu1 %v3083_v3  ;;  %2736 = vmatprep.subr.bf16.mxu0 %v3083_v3 }
 0x41f   : > { %2645 = vmatmul.mubr.msk.bf16.vlgmr.msra.gmra.mrb[12].mxu1 %vm1008_vm3, %v1176_v36 }
 0x420   : > { %2655 = vmatpush3.bf16.msra.mxu1 %v1300_v38  ;;  %2656 = vmatprep.mubr.msk.bf16.mxu1 %vm3084_vm1, %v3083_v3 }
 0x421   : > { %2666 = vmatprep.subr.bf16.mxu1 %v3083_v3  ;;  %v2883_v42 = vpop.eup %2882 }
 0x422   : > { %v1408_v44 = vmul.f32 %v2883_v42, %v3552_v63 }
 0x424   : > { %v1409_v45 = vpack.c.bf16 %v1408_v44, %v1408_v44 }
 0x427   : > { %2657 = vmatmul.mubr.msk.bf16.vlgmr.msra.gmra.mrb[16].mxu1 %vm1008_vm3, %v1293_v41 }
 0x428   : > { %2667 = vmatpush3.bf16.msra.mxu1 %v1416_v43  ;;  %2668 = vmatprep.mubr.msk.bf16.mxu1 %vm3084_vm1, %v3083_v3 }
 0x429   : > { %2678 = vmatprep.subr.bf16.mxu1 %v3083_v3 }
 0x42f   : > { %2669 = vmatmul.mubr.msk.bf16.vlgmr.msra.gmra.mrb[20].mxu1 %vm1008_vm3, %v1409_v45 }
 0x430   : > { %2679 = vmatpush3.bf16.msra.mxu1 %v1538_v46  ;;  %2680 = vmatprep.mubr.msk.bf16.mxu1 %vm3084_vm1, %v3083_v3 }
 0x431   : > { %2690 = vmatprep.subr.bf16.mxu1 %v3083_v3 }
 0x447   : > { %v1529_v47 = vpop.xlane.xlu1 %1528 }
 0x448   : > { %2884 = vrcp.f32 %v1529_v47 }
 0x44b   : > { %v1639_v49 = vpop.xlane.xlu1 %1638  ;;  %v1754_v50 = vpop.xlane.xlu0 %1753 }
 0x44c   : > { %2886 = vrcp.f32 %v1639_v49 }
 0x44d   : > { %2888 = vrcp.f32 %v1754_v50 }
 0x44f   : > { %v1644_v53 = vpop.permute.xlu0 %1643  ;;  %v1869_v57 = vpop.xlane.xlu1 %1868 }
 0x450   : > { %v1649_v58 = vsel %vm1070_vm4, %v1644_v53, 0  ;;  %2890 = vrcp.f32 %v1869_v57 }
 0x452   : > { %v2885_v51 = vpop.eup %2884 }
 0x453   : > { %v1531_v52 = vmul.f32 %v2885_v51, %v3566_v16  ;;  %v1759_v59 = vpop.permute.xlu1 %1758  ;;  %v1874_v60 = vpop.permute.xlu0 %1873 }
 0x454   : > { %v1764_v62 = vsel %vm1070_vm4, %v1759_v59, 0  ;;  %v1879_v2 = vsel %vm1070_vm4, %v1874_v60, 0 }
 0x455   : > { %v1532_v55 = vpack.c.bf16 %v1531_v52, %v1531_v52  ;;  %v2532_v52 = vld [vmem:[%s818_s7] ss:$0 sm:$0xff]  ;;  %s3828_s7 = scalar_lea.vmem [#allocation8], %s3349_s22 }
 0x456   : > { %v2887_v56 = vpop.eup %2886  ;;  %s3829_s14 = smov %s3828_s7 }
 0x457   : > { %2681 = vmatmul.mubr.msk.bf16.vlgmr.msra.gmra.mrb[24].mxu1 %vm1008_vm3, %v1532_v55  ;;  %v1641_v48 = vmul.f32 %v2887_v56, %v3568_v12  ;;  %v2889_v54 = vpop.eup %2888 }
 0x458   : > { %2691 = vmatpush3.bf16.msra.mxu1 %v1649_v58  ;;  %2692 = vmatprep.mubr.msk.bf16.mxu1 %vm3084_vm1, %v3083_v3  ;;  %v1756_v63 = vmul.f32 %v2889_v54, %v3572_v18 }
 0x459   : > { %2702 = vmatprep.subr.bf16.mxu1 %v3083_v3  ;;  %v1642_v61 = vpack.c.bf16 %v1641_v48, %v1641_v48 }
 0x45a   : > { %v1757_v0 = vpack.c.bf16 %v1756_v63, %v1756_v63  ;;  %v2891_v1 = vpop.eup %2890 }
 0x45b   : > { %v1871_v4 = vmul.f32 %v2891_v1, %v3578_v21 }
 0x45d   : > { %v1872_v7 = vpack.c.bf16 %v1871_v4, %v1871_v4 }
 0x45f   : > { %2693 = vmatmul.mubr.msk.bf16.vlgmr.msra.gmra.mrb[28].mxu1 %vm1008_vm3, %v1642_v61 }
 0x460   : > { %2703 = vmatpush3.bf16.msra.mxu1 %v1764_v62  ;;  %2704 = vmatprep.mubr.msk.bf16.mxu1 %vm3084_vm1, %v3083_v3 }
 0x461   : > { %2714 = vmatprep.subr.bf16.mxu1 %v3083_v3 }
 0x467   : > { %2705 = vmatmul.mubr.msk.bf16.vlgmr.msra.gmra.mrb[32].mxu1 %vm1008_vm3, %v1757_v0 }
 0x468   : > { %2715 = vmatpush3.bf16.msra.mxu1 %v1879_v2  ;;  %2716 = vmatprep.mubr.msk.bf16.mxu1 %vm3084_vm1, %v3083_v3 }
 0x469   : > { %2728 = vmatprep.subr.bf16.mxu1 %v3083_v3 }
 0x46f   : > { %2717 = vmatmul.mubr.msk.bf16.vlgmr.msra.gmra.mrb[36].mxu1 %vm1008_vm3, %v1872_v7 }
 0x470   : > { %2732 = vmatprep.mubr.msk.bf16.mxu1 %vm3084_vm1, %v3083_v3 }
 0x4e1   : > { %v1108_v8 = vpop.f32.mrb[8].mxu1 }
 0x4e2   : > { %1114 = vst.msk [vmem:[#allocation2] sm:$0xff] %vm1008_vm3, %v1108_v8  ;;  %v2634_v9 = vpop.f32.mrb[9].mxu1 }
 0x4e3   : > { %v1111_v10 = vpop.f32.mrb[10].mxu1  ;;  %v2854_v9 = vld [vmem:[%s3828_s7] sm:$0xff]   ;;  %s2255_s7 = sshll.u32 %s3095_s29, 4  ;;  %s2256_s7 = int_to_ptr.vmem [resolvable:$true] %s2255_s7 }
 0x4e4   : > { %v2635_v11 = vpop.f32.mrb[11].mxu1  ;;  %2729 = vmatpush3.bf16.msra.mxu1 %v2854_v9  ;;  %v2855_v10 = vld [vmem:[%s3829_s14 + $0x8] sm:$0xff]   ;;  %v2549_v9 = vld [vmem:[%s841_s23] ss:$0 sm:$0xff]  ;;  %p2993_p1 = scmp.lt.s32.totalorder %s2256_s7, %s2256_s7 }
 0x4e5   : > { %2730 = vmatprep.subr.bf16.mxu1 %v3083_v3  ;;  %v2856_v11 = vld [vmem:[%s3406_s30] sm:$0xff]  }
 0x4e8   : > { %2731 = vmatpush3.bf16.msra.mxu1 %v2855_v10 }
 0x4f2   : > { %v1220_v13 = vpop.f32.mrb[12].mxu1 }
 0x4f3   : > { %1227 = vrot.lane.b32.xlu0 %v1220_v13, %s3092_s2  ;;  %v2646_v14 = vpop.f32.mrb[13].mxu1  ;;  %v2857_v13 = vld [vmem:[%s3406_s30 + $0x8] sm:$0xff]  }
 0x4f4   : > { %v1223_v15 = vpop.f32.mrb[14].mxu1 }
 0x4f5   : > { %v2647_v16 = vpop.f32.mrb[15].mxu1 }
 0x4fa   : > { %v1336_v12 = vpop.f32.mrb[16].mxu1 }
 0x4fb   : > { %1343 = vrot.lane.b32.xlu0 %v1336_v12, %s3093_s25  ;;  %v2658_v17 = vpop.f32.mrb[17].mxu1 }
 0x4fc   : > { %v1339_v18 = vpop.f32.mrb[18].mxu1 }
 0x4fd   : > { %v2659_v19 = vpop.f32.mrb[19].mxu1 }
 0x502   : > { %v1452_v20 = vpop.f32.mrb[20].mxu1 }
 0x503   : > { %1459 = vrot.lane.b32.xlu0 %v1452_v20, %s3094_s26  ;;  %v2670_v21 = vpop.f32.mrb[21].mxu1 }
 0x504   : > { %v1455_v22 = vpop.f32.mrb[22].mxu1  ;;  %v2536_v21 = vld [vmem:[%s3831_s11] ss:$0 sm:$0xff] }
 0x505   : > { %v2671_v23 = vpop.f32.mrb[23].mxu1 }
 0x52a   : > { %v1574_v24 = vpop.f32.mrb[24].mxu1 }
 0x52b   : > { %1580 = vst.msk [vmem:[#allocation2 + $0x8] sm:$0xff] %vm1008_vm3, %v1574_v24  ;;  %v2682_v25 = vpop.f32.mrb[25].mxu1 }
 0x52c   : > { %v1577_v26 = vpop.f32.mrb[26].mxu1  ;;  %v2537_v25 = vld [vmem:[%s3833_s20] ss:$0 sm:$0xff] }
 0x52d   : > { %v2683_v27 = vpop.f32.mrb[27].mxu1 }
 0x532   : > { %v1685_v28 = vpop.f32.mrb[28].mxu1 }
 0x533   : > { %1692 = vrot.lane.b32.xlu1 %v1685_v28, %s3092_s2  ;;  %v2694_v29 = vpop.f32.mrb[29].mxu1 }
 0x534   : > { %v1688_v30 = vpop.f32.mrb[30].mxu1 }
 0x535   : > { %v2695_v31 = vpop.f32.mrb[31].mxu1  ;;  %v2858_v30 = vld [vmem:[%s3406_s30 + $0x10] sm:$0xff]  }
 0x536   : > { %v2859_v31 = vld [vmem:[%s3406_s30 + $0x18] sm:$0xff]  }
 0x53a   : > { %v1800_v34 = vpop.f32.mrb[32].mxu1 }
 0x53b   : > { %1807 = vrot.lane.b32.xlu1 %v1800_v34, %s3093_s25  ;;  %v2706_v35 = vpop.f32.mrb[33].mxu1 }
 0x53c   : > { %v1803_v36 = vpop.f32.mrb[34].mxu1 }
 0x53d   : > { %v2707_v37 = vpop.f32.mrb[35].mxu1 }
 0x542   : > { %v1915_v38 = vpop.f32.mrb[36].mxu1 }
 0x543   : > { %1922 = vrot.lane.b32.xlu1 %v1915_v38, %s3094_s26  ;;  %v2718_v39 = vpop.f32.mrb[37].mxu1 }
 0x544   : > { %v1918_v40 = vpop.f32.mrb[38].mxu1 }
 0x545   : > { %v2719_v41 = vpop.f32.mrb[39].mxu1 }
 0x565   : > { %v1228_v42 = vpop.permute.xlu0 %1227 }
 0x566   : > { %1231 = vst.msk [vmem:[#allocation2] sm:$0xff] %vm1230_vm5, %v1228_v42 }
 0x56d   : > { %v1344_v43 = vpop.permute.xlu0 %1343 }
 0x56e   : > { %1347 = vst.msk [vmem:[#allocation2] sm:$0xff] %vm1346_vm6, %v1344_v43 }
 0x575   : > { %v1460_v44 = vpop.permute.xlu0 %1459 }
 0x576   : > { %1463 = vst.msk [vmem:[#allocation2] sm:$0xff] %vm1462_vm7, %v1460_v44 }
 0x57d   : > { %v1926_v49 = vld [vmem:[#allocation2] sm:$0xff] }
 0x5a5   : > { %v1693_v45 = vpop.permute.xlu1 %1692 }
 0x5a6   : > { %1695 = vst.msk [vmem:[#allocation2 + $0x8] sm:$0xff] %vm1230_vm5, %v1693_v45 }
 0x5ad   : > { %v1808_v46 = vpop.permute.xlu1 %1807 }
 0x5ae   : > { %1810 = vst.msk [vmem:[#allocation2 + $0x8] sm:$0xff] %vm1346_vm6, %v1808_v46 }
 0x5b5   : > { %v1923_v47 = vpop.permute.xlu1 %1922 }
 0x5b6   : > { %1925 = vst.msk [vmem:[#allocation2 + $0x8] sm:$0xff] %vm1462_vm7, %v1923_v47 }
 0x5bd   : > { %v1927_v50 = vld [vmem:[#allocation2 + $0x8] sm:$0xff] }
 0x5be   : > { %v1928_v51 = vpack.c.bf16 %v1927_v50, %v1926_v49 }
 0x5c0   : > { %2725 = vmatmul.mubr.msk.bf16.vlgmr.msra.gmra.mrb[32].mxu0 %vm883_vm2, %v1928_v51 }
 0x5c1   : > { %2744 = vmatprep.mubr.msk.bf16.mxu0 %vm3084_vm1, %v3083_v3  ;;  %2737 = vmatpush3.bf16.msra.mxu0 %v2856_v11 }
 0x5c2   : > { %2738 = vmatprep.subr.bf16.mxu0 %v3083_v3 }
 0x5c5   : > { %2739 = vmatpush3.bf16.msra.mxu0 %v2857_v13 }
 0x5c6   : > { %2740 = vmatprep.subr.bf16.mxu0 %v3083_v3 }
 0x5c9   : > { %2741 = vmatpush3.bf16.msra.mxu0 %v2858_v30 }
 0x5ca   : > { %2742 = vmatprep.subr.bf16.mxu0 %v3083_v3  ;;  %v2542_v3 = vld [vmem:[%s835_s24] ss:$0 sm:$0xff] }
 0x5cd   : > { %2743 = vmatpush3.bf16.msra.mxu0 %v2859_v31 }
 0x693   : > { %v1989_v53 = vpop.f32.mrb[32].mxu0 }
 0x694   : > { %v1990_v55 = vadd.f32 %v2532_v52, %v1989_v53  ;;  %v2726_v56 = vpop.f32.mrb[33].mxu0 }
 0x695   : > { %v1992_v57 = vpop.f32.mrb[34].mxu0 }
 0x696   : > { %v1993_v58 = vadd.f32 %v2532_v52, %v1992_v57  ;;  %v2727_v48 = vpop.f32.mrb[35].mxu0  ;;  %v1996_v59 = vadd.f32 %v1990_v55, %v3421_v5 }
 0x698   : > { %v2000_v61 = vsel %vm883_vm2, %v1996_v59, 0.0  ;;  %v1997_v54 = vadd.f32 %v1993_v58, %v3423_v6 }
 0x699   : > { %2001 = vadd.xlane.f32.xlu0 %v2000_v61 }
 0x69a   : > { %v2003_v62 = vsel %vm883_vm2, %v1997_v54, 0.0 }
 0x69b   : > { %2004 = vadd.xlane.f32.xlu1 %v2003_v62 }
 0x726   : > { %v2002_v63 = vpop.xlane.xlu0 %2001 }
 0x727   : > { %v2007_v60 = vmul.f32 0.03125, %v2002_v63 }
 0x728   : > { %v2005_v0 = vpop.xlane.xlu1 %2004 }
 0x729   : > { %v2009_v1 = vsub.f32 %v1996_v59, %v2007_v60  ;;  %v2008_v2 = vmul.f32 0.03125, %v2005_v0 }
 0x72b   : > { %v2010_v4 = vsub.f32 %v1997_v54, %v2008_v2  ;;  %v2011_v7 = vmul.f32 %v2009_v1, %v2009_v1 }
 0x72d   : > { %v2013_v5 = vsel %vm883_vm2, %v2011_v7, 0.0  ;;  %v2012_v8 = vmul.f32 %v2010_v4, %v2010_v4 }
 0x72e   : > { %2014 = vadd.xlane.f32.xlu0 %v2013_v5  ;;  %v2548_v5 = vld [vmem:[%s838_s28] ss:$0 sm:$0xff]  ;;  %s2986_s28 = scalar_lea.vmem %s2256_s7, 256 }
 0x72f   : > { %v2016_v6 = vsel %vm883_vm2, %v2012_v8, 0.0  ;;  %p2987_p3 = scmp.ne.s32.totalorder %s2256_s7, %s2986_s28  ;;  %p2994_p2 = scmp.lt.s32.totalorder %s2986_s28, %s2986_s28 }
 0x731   : > { %p2988_p10 = pnand %p2987_p3, %p2778_p0  ;;  %p2995_p8 = por %p2994_p2, %p2993_p1 }
 0x732   : > { %2017 = vadd.xlane.f32.xlu0 %v2016_v6 }
 0x733   : > { %p2989_p12 = pneg %p2988_p10 }
 0x735   : > { %p2996_p13 = pnand %p2995_p8, %p2989_p12 }
 0x7bb   : > { %v2015_v14 = vpop.xlane.xlu0 %2014 }
 0x7bc   : > { %v2019_v15 = vmul.f32 0.03125, %v2015_v14 }
 0x7be   : > { %v2021_v16 = vadd.f32 1e-05, %v2019_v15 }
 0x7bf   : > { %v2018_v12 = vpop.xlane.xlu0 %2017 }
 0x7c0   : > { %2892 = vrsqrt.f32 %v2021_v16  ;;  %v2020_v17 = vmul.f32 0.03125, %v2018_v12 }
 0x7c2   : > { %v2022_v18 = vadd.f32 1e-05, %v2020_v17 }
 0x7c4   : > { %2894 = vrsqrt.f32 %v2022_v18 }
 0x7ca   : > { %v2893_v19 = vpop.eup %2892 }
 0x7cb   : > { %v2025_v20 = vmul.f32 %v2893_v19, %v2009_v1 }
 0x7cd   : > { %v2033_v23 = vmul.f32 %v2536_v21, %v2025_v20 }
 0x7ce   : > { %v2895_v22 = vpop.eup %2894 }
 0x7cf   : > { %v2026_v24 = vmul.f32 %v2895_v22, %v2010_v4  ;;  %v2041_v27 = vadd.f32 %v2537_v25, %v2033_v23 }
 0x7d1   : > { %v2034_v26 = vmul.f32 %v2536_v21, %v2026_v24 }
 0x7d3   : > { %v2042_v28 = vadd.f32 %v2537_v25, %v2034_v26 }
 0x7d5   : > { %v2043_v29 = vpack.c.bf16 %v2042_v28, %v2041_v27 }
 0x7d7   : > { %2733 = vmatmul.mubr.msk.bf16.vlgmr.msra.gmra.mrb[40].mxu1 %vm883_vm2, %v2043_v29 }
 0x8aa   : > { %v2104_v33 = vpop.f32.mrb[40].mxu1 }
 0x8ab   : > { %v2105_v34 = vadd.f32 %v2538_v32, %v2104_v33  ;;  %v2734_v35 = vpop.f32.mrb[41].mxu1 }
 0x8ac   : > { %v2107_v36 = vpop.f32.mrb[42].mxu1 }
 0x8ad   : > { %v2108_v37 = vadd.f32 %v2538_v32, %v2107_v36  ;;  %v2735_v38 = vpop.f32.mrb[43].mxu1  ;;  %v2111_v39 = vmax.f32 %v2105_v34, 0.0 }
 0x8af   : > { %v2112_v40 = vmax.f32 %v2108_v37, 0.0 }
 0x8b1   : > { %v2113_v41 = vpack.c.bf16 %v2112_v40, %v2111_v39 }
 0x8b3   : > { %2745 = vmatmul.mubr.msk.bf16.vlgmr.msra.gmra.mrb[36].mxu0 %vm2153_vm8, %v2113_v41 }
 0x986   : > { %v2191_v42 = vpop.f32.mrb[36].mxu0 }
 0x987   : > { %v2192_v43 = vadd.f32 %v2542_v3, %v2191_v42  ;;  %v2746_v44 = vpop.f32.mrb[37].mxu0 }
 0x988   : > { %v2194_v45 = vpop.f32.mrb[38].mxu0 }
 0x989   : > { %v2195_v46 = vadd.f32 %v2542_v3, %v2194_v45  ;;  %v2747_v47 = vpop.f32.mrb[39].mxu0  ;;  %v2198_v49 = vadd.f32 %v2192_v43, %v2041_v27 }
 0x98b   : > { %v2202_v50 = vsel %vm883_vm2, %v2198_v49, 0.0  ;;  %v2199_v51 = vadd.f32 %v2195_v46, %v2042_v28 }
 0x98c   : > { %2203 = vadd.xlane.f32.xlu1 %v2202_v50 }
 0x98d   : > { %v2205_v52 = vsel %vm883_vm2, %v2199_v51, 0.0 }
 0x98e   : > { %2206 = vadd.xlane.f32.xlu0 %v2205_v52 }
 0xa19   : > { %v2204_v53 = vpop.xlane.xlu1 %2203 }
 0xa1a   : > { %v2208_v55 = vmul.f32 0.03125, %v2204_v53 }
 0xa1b   : > { %v2207_v56 = vpop.xlane.xlu0 %2206 }
 0xa1c   : > { %v2210_v57 = vsub.f32 %v2198_v49, %v2208_v55  ;;  %v2209_v58 = vmul.f32 0.03125, %v2207_v56 }
 0xa1e   : > { %v2211_v48 = vsub.f32 %v2199_v51, %v2209_v58  ;;  %v2212_v59 = vmul.f32 %v2210_v57, %v2210_v57 }
 0xa20   : > { %v2214_v61 = vsel %vm883_vm2, %v2212_v59, 0.0  ;;  %v2213_v54 = vmul.f32 %v2211_v48, %v2211_v48 }
 0xa21   : > { %2215 = vadd.xlane.f32.xlu1 %v2214_v61 }
 0xa22   : > { %v2217_v62 = vsel %vm883_vm2, %v2213_v54, 0.0 }
 0xa23   : > { %2218 = vadd.xlane.f32.xlu0 %v2217_v62 }
 0xaae   : > { %v2216_v63 = vpop.xlane.xlu1 %2215 }
 0xaaf   : > { %v2220_v60 = vmul.f32 0.03125, %v2216_v63 }
 0xab0   : > { %v2219_v0 = vpop.xlane.xlu0 %2218 }
 0xab1   : > { %v2222_v1 = vadd.f32 1e-05, %v2220_v60  ;;  %v2221_v2 = vmul.f32 0.03125, %v2219_v0 }
 0xab3   : > { %2896 = vrsqrt.f32 %v2222_v1  ;;  %v2223_v4 = vadd.f32 1e-05, %v2221_v2 }
 0xab5   : > { %2898 = vrsqrt.f32 %v2223_v4 }
 0xabd   : > { %v2897_v7 = vpop.eup %2896 }
 0xabe   : > { %v2226_v8 = vmul.f32 %v2897_v7, %v2210_v57 }
 0xabf   : > { %v2899_v6 = vpop.eup %2898 }
 0xac0   : > { %v2234_v10 = vmul.f32 %v2548_v5, %v2226_v8  ;;  %v2227_v11 = vmul.f32 %v2899_v6, %v2211_v48 }
 0xac2   : > { %v2235_v13 = vmul.f32 %v2548_v5, %v2227_v11  ;;  %v2242_v14 = vadd.f32 %v2549_v9, %v2234_v10 }
 0xac4   : > { %v2243_v15 = vadd.f32 %v2549_v9, %v2235_v13  ;;  %2244 = vst.msk [vmem:[#allocation9] sm:$0xff] %vm883_vm2, %v2242_v14 }
 0xac6   : > { %2245 = vst.msk [vmem:[#allocation9 + $0x8] sm:$0xff] %vm883_vm2, %v2243_v15 }
 0xac7   : > { %2999 = shalt.err (!%p2996_p13)
}
 0xac8   : > { %s3838_s14 = sld [smem:[#allocation35_spill]] }
 0xace   : > { %s3000_s22 = scalar_lea.hbm %s3838_s14, 256 }
 0xacf   : > { %p3001_p4 = scmp.ne.s32.totalorder %s3838_s14, %s3000_s22  ;;  %p3006_p7 = scmp.lt.u32.totalorder %s3000_s22, %s3838_s14 }
 0xad1   : > { %p3002_p5 = pnand %p3001_p4, %p2778_p0 }
 0xad3   : > { %p3003_p6 = pneg %p3002_p5 }
 0xad5   : > { %p3008_p9 = pnand %p3006_p7, %p3003_p6 }
 0xad7   : > { %3011 = shalt.err (!%p3008_p9)
}
 0xad8   : > { %s3096_s9 = smov 128  }
 0xad9   : > { %2759 = dma.vmem_to_hbm [thread:$0]  (%p2778_p0), %s2256_s7, 256, %s3838_s14, [#allocation5], %s3096_s9, %s3096_s9, %s3092_s2  }
 0xada   : > { %3049 = dma.done.wait (%p2778_p0), [#allocation5], 256  }
 0xadb   : > { %3051 = vsyncadd (%p2778_p0), [#allocation5], 4294967040 }
 0xadc PF: > { %s3839_s8 = sld [smem:[#allocation17_spill]]  ;;  %s3840_s24 = sld [smem:[#allocation14_spill]] }
 0xadd   : > { %s3841_s25 = sld [smem:[#allocation15_spill]]  ;;  %s3842_s26 = sld [smem:[#allocation19_spill]] }
 0xade   : > { %s3843_s27 = sld [smem:[#allocation16_spill]]  ;;  %s3844_s28 = sld [smem:[#allocation18_spill]] }
 0xae2   : > { %s30_s29 = sadd.s32 1, %s3839_s8  }
 0xae3   : > { %p27_p11 = scmp.ge.s32.totalorder %s30_s29, 4  }
 0xae5   :  { %29 = sbr.rel (!%p27_p11) target bundleno = 22 (0x16), region = 182 }
 0xaec   :  { %2271 = vsyncpa [#allocation4], 1 }
 0xaed   :  { %2273 = vsyncpa [#allocation4 + $0x1], 1 }
 0xaee   :  { %2274 = vsyncpa [#allocation7], 1 }
 0xaef   :  { %2275 = vsyncpa [#allocation5], 1 }
 0xaf0   :  { %2277 = vsyncpa [#allocation5 + $0x1], 1 }

</bundles_post_ra>
